<compile_context>
chip_gen: v7x
topology: tpu7x:2x2x1
jax: 0.10.0
libtpu: 0.0.40
codegen_flags: <defaults>
</compile_context>

<pallas_src>
from functools import partial

import jax
import jax.numpy as jnp
from jax.experimental import pallas as pl
from jax.experimental.pallas import tpu as pltpu

EPS = 1e-5          # nn.BatchNorm2d default
NEG_SLOPE = 0.01    # nn.LeakyReLU default
GUARD = 8           # sublane-aligned guard rows above/below the staging slab
LANE = 128


def _round_up(x, m):
    return (x + m - 1) // m * m


# ----------------------------------------------------------------------------
# in-kernel helpers
# ----------------------------------------------------------------------------
def _stage_slab(slab_ref, interior, *, Hp, Wp, C):
    """Stage the (HW, C) interior into the kh-folded bf16 slab (2*GUARD+HW, 3*C).

    Column block kh in {0,1,2} holds input row (h + kh - 1) aligned to output
    row h.  The conv's zero H-padding (top row's kh=0 block, bottom row's kh=2
    block) and the two guard rows touched by the +/-1 column shifts are
    re-zeroed every step: a one-time @pl.when(program_id == 0) init would be
    skipped on the second TensorCore if the batch axis is megacore-split.
    """
    HW = Hp * Wp
    a = interior.astype(slab_ref.dtype)              # single cast (bf16 slab)
    zrow_w = jnp.zeros((Wp, C), slab_ref.dtype)
    zrow_1 = jnp.zeros((1, 3 * C), slab_ref.dtype)
    # kh = 0 block (input row h-1)
    slab_ref[GUARD:GUARD + Wp, 0:C] = zrow_w
    slab_ref[GUARD + Wp:GUARD + HW, 0:C] = a[0:HW - Wp, :]
    # kh = 1 block (input row h)
    slab_ref[GUARD:GUARD + HW, C:2 * C] = a
    # kh = 2 block (input row h+1)
    slab_ref[GUARD:GUARD + HW - Wp, 2 * C:3 * C] = a[Wp:HW, :]
    slab_ref[GUARD + HW - Wp:GUARD + HW, 2 * C:3 * C] = zrow_w
    # guard rows read by the dw = -1 / +1 contiguous window shifts
    slab_ref[GUARD - 1:GUARD, :] = zrow_1
    slab_ref[GUARD + HW:GUARD + HW + 1, :] = zrow_1


def _conv3x3_from_slab(slab_ref, w_ref, ml, mr, acc_ref, *, HW):
    """3x3 SAME conv as 3 kw-offset matmuls (kh taps folded into K = 3*Cin).

    slab_ref : (2*GUARD+HW, 3*Cin) bf16, interior at rows [GUARD, GUARD+HW)
    w_ref    : (3, 3*Cin, Cout) bf16, index 0 = kw (column offset kw-1)
    ml, mr   : (HW, 1) f32 W-edge masks, applied post-dot (per output row)
    acc_ref  : (HW, Cout) f32 accumulator scratch
    """
    acc_ref[...] = jnp.dot(slab_ref[GUARD:GUARD + HW, :], w_ref[1],
                           preferred_element_type=jnp.float32)
    left = jnp.dot(slab_ref[GUARD - 1:GUARD - 1 + HW, :], w_ref[0],
                   preferred_element_type=jnp.float32)
    acc_ref[...] += left * ml
    right = jnp.dot(slab_ref[GUARD + 1:GUARD + 1 + HW, :], w_ref[2],
                    preferred_element_type=jnp.float32)
    acc_ref[...] += right * mr


# ----------------------------------------------------------------------------
# kernels
# ----------------------------------------------------------------------------
def _pool_conv1_kernel(x00_ref, x01_ref, x10_ref, x11_ref, w_ref, ml_ref, mr_ref,
                       y_ref, st_ref, slab_ref, acc_ref, *, Hp, Wp):
    HW = Hp * Wp
    Cin = x00_ref.shape[-1]
    # MaxPool2d(2): max of the four pre-split bf16 window corners (max is
    # monotone under round-to-nearest, so pooling in bf16 == cast(pool(f32))).
    pooled = jnp.maximum(jnp.maximum(x00_ref[...], x01_ref[...]),
                         jnp.maximum(x10_ref[...], x11_ref[...]))
    _stage_slab(slab_ref, pooled, Hp=Hp, Wp=Wp, C=Cin)
    _conv3x3_from_slab(slab_ref, w_ref, ml_ref[...], mr_ref[...], acc_ref, HW=HW)
    a = acc_ref[...]
    y_ref[...] = a.astype(y_ref.dtype)                     # raw conv1 (pre-BN), bf16
    st_ref[0:1, :] = jnp.sum(a, axis=0, keepdims=True)     # per-image BN1 sums
    st_ref[1:2, :] = jnp.sum(a * a, axis=0, keepdims=True)


def _bn_lrelu_conv2_kernel(y1_ref, sc_ref, sh_ref, w_ref, ml_ref, mr_ref,
                           y2_ref, st_ref, slab_ref, acc_ref, *, Hp, Wp):
    HW = Hp * Wp
    Cmid = y1_ref.shape[-1]
    a = y1_ref[...].astype(jnp.float32) * sc_ref[...] + sh_ref[...]  # BN1 affine, f32
    a = jnp.where(a >= 0, a, NEG_SLOPE * a)                          # LeakyReLU(0.01)
    _stage_slab(slab_ref, a, Hp=Hp, Wp=Wp, C=Cmid)
    _conv3x3_from_slab(slab_ref, w_ref, ml_ref[...], mr_ref[...], acc_ref, HW=HW)
    r = acc_ref[...]
    y2_ref[...] = r.astype(y2_ref.dtype)                   # raw conv2 (pre-BN), bf16
    st_ref[0:1, :] = jnp.sum(r, axis=0, keepdims=True)     # per-image BN2 sums
    st_ref[1:2, :] = jnp.sum(r * r, axis=0, keepdims=True)


# ----------------------------------------------------------------------------
# wrapper
# ----------------------------------------------------------------------------
def _fold_bn(stats, gamma, beta, count):
    """(N, 2, C) per-image [sum, sumsq] -> per-channel (1, C) scale/shift (f32)."""
    s = jnp.sum(stats[:, 0, :], axis=0)
    ss = jnp.sum(stats[:, 1, :], axis=0)
    mean = s / count
    var = jnp.maximum(ss / count - mean * mean, 0.0)        # biased variance
    scale = gamma * jax.lax.rsqrt(var + EPS)
    shift = beta - mean * scale
    return (scale.reshape(1, -1).astype(jnp.float32),
            shift.reshape(1, -1).astype(jnp.float32))


def _fold_weights(w, cin_p, cout_p):
    """(3,3,Cin,Cout) HWIO -> (kw, kh*Cin_p, Cout_p) bf16 for the kh-folded conv."""
    _, _, cin, cout = w.shape
    wp = jnp.pad(w, ((0, 0), (0, 0), (0, cin_p - cin), (0, cout_p - cout)))
    return (jnp.transpose(wp, (1, 0, 2, 3))
            .reshape(3, 3 * cin_p, cout_p).astype(jnp.bfloat16))


def _compiler_params():
    kind = ""
    try:
        kind = jax.devices()[0].device_kind.lower()
    except Exception:
        pass
    # v5e/v6e have 128 MiB physical VMEM per core; v7x only 64 MiB -> headroom.
    mib = 100 if ("v5" in kind or "v6" in kind) else 48
    return pltpu.CompilerParams(dimension_semantics=("parallel",),
                                vmem_limit_bytes=mib * 1024 * 1024)


def down_pallas(x_nchw, w1, g1, b1, w2, g2, b2):
    N, Cin, H, W = x_nchw.shape
    Cout = w1.shape[-1]
    assert H % 2 == 0 and W % 2 == 0, "MaxPool2d(2) needs even spatial dims"
    Hp, Wp = H // 2, W // 2
    assert Hp >= 2 and Wp >= 2
    HW = Hp * Wp
    Cin_p = _round_up(Cin, LANE)
    Cout_p = _round_up(Cout, LANE)
    slab_rows = 2 * GUARD + HW

    # ---- wrapper layout glue: NCHW -> bf16 NHWC (channel-padded), pool corners
    x_nhwc = jnp.transpose(x_nchw, (0, 2, 3, 1)).astype(jnp.bfloat16)
    if Cin_p != Cin:
        x_nhwc = jnp.pad(x_nhwc, ((0, 0), (0, 0), (0, 0), (0, Cin_p - Cin)))
    x00 = x_nhwc[:, 0::2, 0::2, :].reshape(N, HW, Cin_p)
    x01 = x_nhwc[:, 0::2, 1::2, :].reshape(N, HW, Cin_p)
    x10 = x_nhwc[:, 1::2, 0::2, :].reshape(N, HW, Cin_p)
    x11 = x_nhwc[:, 1::2, 1::2, :].reshape(N, HW, Cin_p)

    w1f = _fold_weights(w1, Cin_p, Cout_p)     # (3, 3*Cin_p, Cout_p) bf16
    w2f = _fold_weights(w2, Cout_p, Cout_p)    # (3, 3*Cout_p, Cout_p) bf16

    # W-edge masks for the +/-1 column-offset taps (the conv's zero W-padding),
    # applied post-dot on the (HW, Cout_p) partials inside the kernels.
    wpos = jnp.tile(jnp.arange(Wp, dtype=jnp.int32), Hp)
    mask_l = (wpos >= 1).astype(jnp.float32).reshape(HW, 1)
    mask_r = (wpos <= Wp - 2).astype(jnp.float32).reshape(HW, 1)

    cparams = _compiler_params()

    row_in = pl.BlockSpec((None, HW, Cin_p), lambda n: (n, 0, 0))
    row_mid = pl.BlockSpec((None, HW, Cout_p), lambda n: (n, 0, 0))
    st_spec = pl.BlockSpec((None, 2, Cout_p), lambda n: (n, 0, 0))
    m_spec = pl.BlockSpec((HW, 1), lambda n: (0, 0))
    v_spec = pl.BlockSpec((1, Cout_p), lambda n: (0, 0))
    w1_spec = pl.BlockSpec((3, 3 * Cin_p, Cout_p), lambda n: (0, 0, 0))
    w2_spec = pl.BlockSpec((3, 3 * Cout_p, Cout_p), lambda n: (0, 0, 0))

    # ---- pass 1: maxpool + conv1 (raw, bf16) + per-image BN1 partial sums ----
    y1_raw, st1 = pl.pallas_call(
        partial(_pool_conv1_kernel, Hp=Hp, Wp=Wp),
        grid=(N,),
        in_specs=[row_in, row_in, row_in, row_in, w1_spec, m_spec, m_spec],
        out_specs=(row_mid, st_spec),
        out_shape=(jax.ShapeDtypeStruct((N, HW, Cout_p), jnp.bfloat16),
                   jax.ShapeDtypeStruct((N, 2, Cout_p), jnp.float32)),
        scratch_shapes=[pltpu.VMEM((slab_rows, 3 * Cin_p), jnp.bfloat16),
                        pltpu.VMEM((HW, Cout_p), jnp.float32)],
        compiler_params=cparams,
    )(x00, x01, x10, x11, w1f, mask_l, mask_r)

    scale1, shift1 = _fold_bn(st1[:, :, :Cout], g1, b1, N * HW)
    sc1 = jnp.pad(scale1, ((0, 0), (0, Cout_p - Cout)))
    sh1 = jnp.pad(shift1, ((0, 0), (0, Cout_p - Cout)))

    # ---- pass 2: BN1 + LeakyReLU + conv2 (raw, bf16) + per-image BN2 sums ----
    y2_raw, st2 = pl.pallas_call(
        partial(_bn_lrelu_conv2_kernel, Hp=Hp, Wp=Wp),
        grid=(N,),
        in_specs=[row_mid, v_spec, v_spec, w2_spec, m_spec, m_spec],
        out_specs=(row_mid, st_spec),
        out_shape=(jax.ShapeDtypeStruct((N, HW, Cout_p), jnp.bfloat16),
                   jax.ShapeDtypeStruct((N, 2, Cout_p), jnp.float32)),
        scratch_shapes=[pltpu.VMEM((slab_rows, 3 * Cout_p), jnp.bfloat16),
                        pltpu.VMEM((HW, Cout_p), jnp.float32)],
        compiler_params=cparams,
    )(y1_raw, sc1, sh1, w2f, mask_l, mask_r)

    # ---- epilogue in plain JAX: BN2 affine + LeakyReLU fused by XLA with the
    #      channel slice and NCHW transpose (no extra Pallas HBM round trip) ----
    scale2, shift2 = _fold_bn(st2[:, :, :Cout], g2, b2, N * HW)
    out = y2_raw[:, :, :Cout].astype(jnp.float32) * scale2 + shift2
    out = jnp.where(out >= 0, out, NEG_SLOPE * out)
    return jnp.transpose(out.reshape(N, Hp, Wp, Cout), (0, 3, 1, 2))  # NCHW


# ----------------------------------------------------------------------------
# pure-JAX reference (fp32, training-mode BN, LeakyReLU 0.01)
# ----------------------------------------------------------------------------
def down_ref(x_nchw, w1, g1, b1, w2, g2, b2):
    x = jnp.transpose(x_nchw, (0, 2, 3, 1))
    N, H, W, Cin = x.shape
    p = x.reshape(N, H // 2, 2, W // 2, 2, Cin).max(axis=(2, 4))

    def conv(z, w):
        return jax.lax.conv_general_dilated(
            z, w, (1, 1), "SAME",
            dimension_numbers=("NHWC", "HWIO", "NHWC"),
            preferred_element_type=jnp.float32)

    def bn(z, g, b):
        m = z.mean(axis=(0, 1, 2), keepdims=True)
        v = ((z - m) ** 2).mean(axis=(0, 1, 2), keepdims=True)
        return (z - m) * jax.lax.rsqrt(v + EPS) * g + b

    def lrelu(z):
        return jnp.where(z >= 0, z, NEG_SLOPE * z)

    y = lrelu(bn(conv(p, w1), g1, b1))
    y = lrelu(bn(conv(y, w2), g2, b2))
    return jnp.transpose(y, (0, 3, 1, 2))


if __name__ == "__main__":
    N, Cin, Cout, H, W = 2, 4, 8, 16, 16

    key = jax.random.PRNGKey(0)
    kx, k1, k2 = jax.random.split(key, 3)

    x = jax.random.normal(kx, (N, Cin, H, W), jnp.float32)
    # Conv weights in HWIO layout, kaiming-like scale; BN affine = identity
    # (matches fresh nn.BatchNorm2d init: gamma=1, beta=0).
    w1 = jax.random.normal(k1, (3, 3, Cin, Cout), jnp.float32) * (2.0 / (9 * Cin)) ** 0.5
    w2 = jax.random.normal(k2, (3, 3, Cout, Cout), jnp.float32) * (2.0 / (9 * Cout)) ** 0.5
    g1 = jnp.ones((Cout,), jnp.float32)
    b1 = jnp.zeros((Cout,), jnp.float32)
    g2 = jnp.ones((Cout,), jnp.float32)
    b2 = jnp.zeros((Cout,), jnp.float32)

    out = jax.block_until_ready(down_pallas(x, w1, g1, b1, w2, g2, b2))
    ref = jax.block_until_ready(down_ref(x, w1, g1, b1, w2, g2, b2))

    assert out.shape == (N, Cout, H // 2, W // 2), out.shape
    assert bool(jnp.all(jnp.isfinite(out)))
    # bf16 MXU operands + bf16 inputs/intermediates (f32 accumulation & BN math)
    # shift results by O(1e-2) vs the fp32 reference -> relaxed tolerance.
    if not jnp.allclose(out, ref, rtol=3e-2, atol=3e-2):
        raise AssertionError(
            f"mismatch vs reference, max abs err = {float(jnp.max(jnp.abs(out - ref)))}")

    print("KERNEL_OK")
</pallas_src>

<mosaic_0001>
module attributes {stable_mosaic.version = 11 : i64} {
  func.func @_pool_conv1_kernel(%arg0: i32, %arg1: memref<1x64x128xbf16, #tpu.memory_space<vmem>>, %arg2: memref<1x64x128xbf16, #tpu.memory_space<vmem>>, %arg3: memref<1x64x128xbf16, #tpu.memory_space<vmem>>, %arg4: memref<1x64x128xbf16, #tpu.memory_space<vmem>>, %arg5: memref<3x384x128xbf16, #tpu.memory_space<vmem>>, %arg6: memref<64x1xf32, #tpu.memory_space<vmem>>, %arg7: memref<64x1xf32, #tpu.memory_space<vmem>>, %arg8: memref<1x64x128xbf16, #tpu.memory_space<vmem>>, %arg9: memref<1x2x128xf32, #tpu.memory_space<vmem>>, %arg10: memref<80x384xbf16, #tpu.memory_space<vmem>>, %arg11: memref<64x128xf32, #tpu.memory_space<vmem>>) attributes {dimension_semantics = [#tpu.dimension_semantics<parallel>], iteration_bounds = array<i64: 2>, scalar_prefetch = 0 : i64, scratch_operands = 2 : i64, tpu.core_type = #tpu.core_type<tc>, window_params = [{transform_indices = @transform_0, window_bounds = array<i64: 1, 64, 128>}, {transform_indices = @transform_1, window_bounds = array<i64: 1, 64, 128>}, {transform_indices = @transform_2, window_bounds = array<i64: 1, 64, 128>}, {transform_indices = @transform_3, window_bounds = array<i64: 1, 64, 128>}, {pipeline_mode = #tpu.pipeline_mode<synchronous>, transform_indices = @transform_4, window_bounds = array<i64: 3, 384, 128>}, {pipeline_mode = #tpu.pipeline_mode<synchronous>, transform_indices = @transform_5, window_bounds = array<i64: 64, 1>}, {pipeline_mode = #tpu.pipeline_mode<synchronous>, transform_indices = @transform_6, window_bounds = array<i64: 64, 1>}, {transform_indices = @transform_7, window_bounds = array<i64: 1, 64, 128>}, {transform_indices = @transform_8, window_bounds = array<i64: 1, 2, 128>}]} {
    %c0 = arith.constant 0 : index
    %c0_0 = arith.constant 0 : index
    %c0_1 = arith.constant 0 : index
    %0 = vector.load %arg1[%c0, %c0_0, %c0_1] : memref<1x64x128xbf16, #tpu.memory_space<vmem>>, vector<1x64x128xbf16>
    %1 = vector.shape_cast %0 : vector<1x64x128xbf16> to vector<64x128xbf16>
    %c0_2 = arith.constant 0 : index
    %c0_3 = arith.constant 0 : index
    %c0_4 = arith.constant 0 : index
    %2 = vector.load %arg2[%c0_2, %c0_3, %c0_4] : memref<1x64x128xbf16, #tpu.memory_space<vmem>>, vector<1x64x128xbf16>
    %3 = vector.shape_cast %2 : vector<1x64x128xbf16> to vector<64x128xbf16>
    %4 = arith.maximumf %1, %3 : vector<64x128xbf16>
    %c0_5 = arith.constant 0 : index
    %c0_6 = arith.constant 0 : index
    %c0_7 = arith.constant 0 : index
    %5 = vector.load %arg3[%c0_5, %c0_6, %c0_7] : memref<1x64x128xbf16, #tpu.memory_space<vmem>>, vector<1x64x128xbf16>
    %6 = vector.shape_cast %5 : vector<1x64x128xbf16> to vector<64x128xbf16>
    %c0_8 = arith.constant 0 : index
    %c0_9 = arith.constant 0 : index
    %c0_10 = arith.constant 0 : index
    %7 = vector.load %arg4[%c0_8, %c0_9, %c0_10] : memref<1x64x128xbf16, #tpu.memory_space<vmem>>, vector<1x64x128xbf16>
    %8 = vector.shape_cast %7 : vector<1x64x128xbf16> to vector<64x128xbf16>
    %9 = arith.maximumf %6, %8 : vector<64x128xbf16>
    %10 = arith.maximumf %4, %9 : vector<64x128xbf16>
    %cst = arith.constant 0.000000e+00 : bf16
    %11 = vector.broadcast %cst : bf16 to vector<8x128xbf16>
    %cst_11 = arith.constant 0.000000e+00 : bf16
    %12 = vector.broadcast %cst_11 : bf16 to vector<1x384xbf16>
    %c8 = arith.constant 8 : index
    %c0_12 = arith.constant 0 : index
    %13 = vector.load %arg10[%c8, %c0_12] : memref<80x384xbf16, #tpu.memory_space<vmem>>, vector<8x128xbf16>
    tpu.vector_store %arg10[%c8, %c0_12], %11 {strides = array<i32>} : memref<80x384xbf16, #tpu.memory_space<vmem>>, vector<8x128xbf16>,
    %14 = vector.extract_strided_slice %10 {offsets = [0, 0], sizes = [56, 128], strides = [1, 1]} : vector<64x128xbf16> to vector<56x128xbf16>
    %c16 = arith.constant 16 : index
    %c0_13 = arith.constant 0 : index
    %15 = vector.load %arg10[%c16, %c0_13] : memref<80x384xbf16, #tpu.memory_space<vmem>>, vector<56x128xbf16>
    tpu.vector_store %arg10[%c16, %c0_13], %14 {strides = array<i32>} : memref<80x384xbf16, #tpu.memory_space<vmem>>, vector<56x128xbf16>,
    %c8_14 = arith.constant 8 : index
    %c128 = arith.constant 128 : index
    %16 = vector.load %arg10[%c8_14, %c128] : memref<80x384xbf16, #tpu.memory_space<vmem>>, vector<64x128xbf16>
    tpu.vector_store %arg10[%c8_14, %c128], %10 {strides = array<i32>} : memref<80x384xbf16, #tpu.memory_space<vmem>>, vector<64x128xbf16>,
    %17 = vector.extract_strided_slice %10 {offsets = [8, 0], sizes = [56, 128], strides = [1, 1]} : vector<64x128xbf16> to vector<56x128xbf16>
    %c8_15 = arith.constant 8 : index
    %c256 = arith.constant 256 : index
    %18 = vector.load %arg10[%c8_15, %c256] : memref<80x384xbf16, #tpu.memory_space<vmem>>, vector<56x128xbf16>
    tpu.vector_store %arg10[%c8_15, %c256], %17 {strides = array<i32>} : memref<80x384xbf16, #tpu.memory_space<vmem>>, vector<56x128xbf16>,
    %c64 = arith.constant 64 : index
    %c256_16 = arith.constant 256 : index
    %19 = vector.load %arg10[%c64, %c256_16] : memref<80x384xbf16, #tpu.memory_space<vmem>>, vector<8x128xbf16>
    tpu.vector_store %arg10[%c64, %c256_16], %11 {strides = array<i32>} : memref<80x384xbf16, #tpu.memory_space<vmem>>, vector<8x128xbf16>,
    %c7 = arith.constant 7 : index
    %c0_17 = arith.constant 0 : index
    %20 = vector.load %arg10[%c7, %c0_17] : memref<80x384xbf16, #tpu.memory_space<vmem>>, vector<1x384xbf16>
    tpu.vector_store %arg10[%c7, %c0_17], %12 {strides = array<i32>} : memref<80x384xbf16, #tpu.memory_space<vmem>>, vector<1x384xbf16>,
    %c72 = arith.constant 72 : index
    %c0_18 = arith.constant 0 : index
    %21 = vector.load %arg10[%c72, %c0_18] : memref<80x384xbf16, #tpu.memory_space<vmem>>, vector<1x384xbf16>
    tpu.vector_store %arg10[%c72, %c0_18], %12 {strides = array<i32>} : memref<80x384xbf16, #tpu.memory_space<vmem>>, vector<1x384xbf16>,
    %c0_19 = arith.constant 0 : index
    %c0_20 = arith.constant 0 : index
    %22 = vector.load %arg6[%c0_19, %c0_20] : memref<64x1xf32, #tpu.memory_space<vmem>>, vector<64x1xf32>
    %c0_21 = arith.constant 0 : index
    %c0_22 = arith.constant 0 : index
    %23 = vector.load %arg7[%c0_21, %c0_22] : memref<64x1xf32, #tpu.memory_space<vmem>>, vector<64x1xf32>
    %c8_23 = arith.constant 8 : index
    %c0_24 = arith.constant 0 : index
    %24 = vector.load %arg10[%c8_23, %c0_24] : memref<80x384xbf16, #tpu.memory_space<vmem>>, vector<64x384xbf16>
    %c1 = arith.constant 1 : index
    %c0_25 = arith.constant 0 : index
    %c0_26 = arith.constant 0 : index
    %25 = vector.load %arg5[%c1, %c0_25, %c0_26] : memref<3x384x128xbf16, #tpu.memory_space<vmem>>, vector<1x384x128xbf16>
    %26 = vector.shape_cast %25 : vector<1x384x128xbf16> to vector<384x128xbf16>
    %cst_27 = arith.constant dense<0.000000e+00> : vector<64x128xf32>
    %27 = tpu.matmul %24, %26, %cst_27 {dimension_numbers = #tpu.dot_dimension_numbers<[1], [0], [0], [1], [0, 0, 1, 1], [], []>} : vector<64x384xbf16>, vector<384x128xbf16>, vector<64x128xf32> -> vector<64x128xf32>
    %c0_28 = arith.constant 0 : index
    %c0_29 = arith.constant 0 : index
    %28 = vector.load %arg11[%c0_28, %c0_29] : memref<64x128xf32, #tpu.memory_space<vmem>>, vector<64x128xf32>
    tpu.vector_store %arg11[%c0_28, %c0_29], %27 {strides = array<i32>} : memref<64x128xf32, #tpu.memory_space<vmem>>, vector<64x128xf32>,
    %c7_30 = arith.constant 7 : index
    %c0_31 = arith.constant 0 : index
    %29 = vector.load %arg10[%c7_30, %c0_31] : memref<80x384xbf16, #tpu.memory_space<vmem>>, vector<64x384xbf16>
    %c0_32 = arith.constant 0 : index
    %c0_33 = arith.constant 0 : index
    %c0_34 = arith.constant 0 : index
    %30 = vector.load %arg5[%c0_32, %c0_33, %c0_34] : memref<3x384x128xbf16, #tpu.memory_space<vmem>>, vector<1x384x128xbf16>
    %31 = vector.shape_cast %30 : vector<1x384x128xbf16> to vector<384x128xbf16>
    %cst_35 = arith.constant dense<0.000000e+00> : vector<64x128xf32>
    %32 = tpu.matmul %29, %31, %cst_35 {dimension_numbers = #tpu.dot_dimension_numbers<[1], [0], [0], [1], [0, 0, 1, 1], [], []>} : vector<64x384xbf16>, vector<384x128xbf16>, vector<64x128xf32> -> vector<64x128xf32>
    %c0_36 = arith.constant 0 : index
    %c0_37 = arith.constant 0 : index
    %33 = vector.load %arg11[%c0_36, %c0_37] : memref<64x128xf32, #tpu.memory_space<vmem>>, vector<64x128xf32>
    %34 = vector.broadcast %22 : vector<64x1xf32> to vector<64x128xf32>
    %35 = arith.mulf %32, %34 : vector<64x128xf32>
    %36 = arith.addf %33, %35 : vector<64x128xf32>
    %c0_38 = arith.constant 0 : index
    %c0_39 = arith.constant 0 : index
    %37 = vector.load %arg11[%c0_38, %c0_39] : memref<64x128xf32, #tpu.memory_space<vmem>>, vector<64x128xf32>
    tpu.vector_store %arg11[%c0_38, %c0_39], %36 {strides = array<i32>} : memref<64x128xf32, #tpu.memory_space<vmem>>, vector<64x128xf32>,
    %c9 = arith.constant 9 : index
    %c0_40 = arith.constant 0 : index
    %38 = vector.load %arg10[%c9, %c0_40] : memref<80x384xbf16, #tpu.memory_space<vmem>>, vector<64x384xbf16>
    %c2 = arith.constant 2 : index
    %c0_41 = arith.constant 0 : index
    %c0_42 = arith.constant 0 : index
    %39 = vector.load %arg5[%c2, %c0_41, %c0_42] : memref<3x384x128xbf16, #tpu.memory_space<vmem>>, vector<1x384x128xbf16>
    %40 = vector.shape_cast %39 : vector<1x384x128xbf16> to vector<384x128xbf16>
    %cst_43 = arith.constant dense<0.000000e+00> : vector<64x128xf32>
    %41 = tpu.matmul %38, %40, %cst_43 {dimension_numbers = #tpu.dot_dimension_numbers<[1], [0], [0], [1], [0, 0, 1, 1], [], []>} : vector<64x384xbf16>, vector<384x128xbf16>, vector<64x128xf32> -> vector<64x128xf32>
    %c0_44 = arith.constant 0 : index
    %c0_45 = arith.constant 0 : index
    %42 = vector.load %arg11[%c0_44, %c0_45] : memref<64x128xf32, #tpu.memory_space<vmem>>, vector<64x128xf32>
    %43 = vector.broadcast %23 : vector<64x1xf32> to vector<64x128xf32>
    %44 = arith.mulf %41, %43 : vector<64x128xf32>
    %45 = arith.addf %42, %44 : vector<64x128xf32>
    %c0_46 = arith.constant 0 : index
    %c0_47 = arith.constant 0 : index
    %46 = vector.load %arg11[%c0_46, %c0_47] : memref<64x128xf32, #tpu.memory_space<vmem>>, vector<64x128xf32>
    tpu.vector_store %arg11[%c0_46, %c0_47], %45 {strides = array<i32>} : memref<64x128xf32, #tpu.memory_space<vmem>>, vector<64x128xf32>,
    %c0_48 = arith.constant 0 : index
    %c0_49 = arith.constant 0 : index
    %47 = vector.load %arg11[%c0_48, %c0_49] : memref<64x128xf32, #tpu.memory_space<vmem>>, vector<64x128xf32>
    %48 = arith.truncf %47 : vector<64x128xf32> to vector<64x128xbf16>
    %c0_50 = arith.constant 0 : index
    %c0_51 = arith.constant 0 : index
    %c0_52 = arith.constant 0 : index
    %49 = vector.load %arg8[%c0_50, %c0_51, %c0_52] : memref<1x64x128xbf16, #tpu.memory_space<vmem>>, vector<1x64x128xbf16>
    %50 = vector.shape_cast %49 : vector<1x64x128xbf16> to vector<64x128xbf16>
    %51 = vector.shape_cast %48 : vector<64x128xbf16> to vector<1x64x128xbf16>
    tpu.vector_store %arg8[%c0_50, %c0_51, %c0_52], %51 {strides = array<i32>} : memref<1x64x128xbf16, #tpu.memory_space<vmem>>, vector<1x64x128xbf16>,
    %cst_53 = arith.constant dense<0.000000e+00> : vector<128xf32>
    %52 = vector.multi_reduction <add>, %47, %cst_53 [0] : vector<64x128xf32> to vector<128xf32>
    %53 = vector.shape_cast %52 : vector<128xf32> to vector<1x128xf32>
    %c0_54 = arith.constant 0 : index
    %c0_55 = arith.constant 0 : index
    %c0_56 = arith.constant 0 : index
    %54 = vector.load %arg9[%c0_54, %c0_55, %c0_56] : memref<1x2x128xf32, #tpu.memory_space<vmem>>, vector<1x1x128xf32>
    %55 = vector.shape_cast %54 : vector<1x1x128xf32> to vector<1x128xf32>
    %56 = vector.shape_cast %53 : vector<1x128xf32> to vector<1x1x128xf32>
    tpu.vector_store %arg9[%c0_54, %c0_55, %c0_56], %56 {strides = array<i32>} : memref<1x2x128xf32, #tpu.memory_space<vmem>>, vector<1x1x128xf32>,
    %57 = arith.mulf %47, %47 : vector<64x128xf32>
    %cst_57 = arith.constant dense<0.000000e+00> : vector<128xf32>
    %58 = vector.multi_reduction <add>, %57, %cst_57 [0] : vector<64x128xf32> to vector<128xf32>
    %59 = vector.shape_cast %58 : vector<128xf32> to vector<1x128xf32>
    %c0_58 = arith.constant 0 : index
    %c1_59 = arith.constant 1 : index
    %c0_60 = arith.constant 0 : index
    %60 = vector.load %arg9[%c0_58, %c1_59, %c0_60] : memref<1x2x128xf32, #tpu.memory_space<vmem>>, vector<1x1x128xf32>
    %61 = vector.shape_cast %60 : vector<1x1x128xf32> to vector<1x128xf32>
    %62 = vector.shape_cast %59 : vector<1x128xf32> to vector<1x1x128xf32>
    tpu.vector_store %arg9[%c0_58, %c1_59, %c0_60], %62 {strides = array<i32>} : memref<1x2x128xf32, #tpu.memory_space<vmem>>, vector<1x1x128xf32>,
    return
  }
  func.func @transform_0(%arg0: i32) -> (i32, i32, i32) {
    %c0_i32 = arith.constant 0 : i32
    %c0_i32_0 = arith.constant 0 : i32
    %c0_i32_1 = arith.constant 0 : i32
    return %arg0, %c0_i32, %c0_i32_0 : i32, i32, i32
  }
  func.func @transform_1(%arg0: i32) -> (i32, i32, i32) {
    %c0_i32 = arith.constant 0 : i32
    %c0_i32_0 = arith.constant 0 : i32
    %c0_i32_1 = arith.constant 0 : i32
    return %arg0, %c0_i32, %c0_i32_0 : i32, i32, i32
  }
  func.func @transform_2(%arg0: i32) -> (i32, i32, i32) {
    %c0_i32 = arith.constant 0 : i32
    %c0_i32_0 = arith.constant 0 : i32
    %c0_i32_1 = arith.constant 0 : i32
    return %arg0, %c0_i32, %c0_i32_0 : i32, i32, i32
  }
  func.func @transform_3(%arg0: i32) -> (i32, i32, i32) {
    %c0_i32 = arith.constant 0 : i32
    %c0_i32_0 = arith.constant 0 : i32
    %c0_i32_1 = arith.constant 0 : i32
    return %arg0, %c0_i32, %c0_i32_0 : i32, i32, i32
  }
  func.func @transform_4(%arg0: i32) -> (i32, i32, i32) {
    %c0_i32 = arith.constant 0 : i32
    %c0_i32_0 = arith.constant 0 : i32
    %c0_i32_1 = arith.constant 0 : i32
    %c0_i32_2 = arith.constant 0 : i32
    return %c0_i32, %c0_i32_0, %c0_i32_1 : i32, i32, i32
  }
  func.func @transform_5(%arg0: i32) -> (i32, i32) {
    %c0_i32 = arith.constant 0 : i32
    %c0_i32_0 = arith.constant 0 : i32
    %c0_i32_1 = arith.constant 0 : i32
    return %c0_i32, %c0_i32_0 : i32, i32
  }
  func.func @transform_6(%arg0: i32) -> (i32, i32) {
    %c0_i32 = arith.constant 0 : i32
    %c0_i32_0 = arith.constant 0 : i32
    %c0_i32_1 = arith.constant 0 : i32
    return %c0_i32, %c0_i32_0 : i32, i32
  }
  func.func @transform_7(%arg0: i32) -> (i32, i32, i32) {
    %c0_i32 = arith.constant 0 : i32
    %c0_i32_0 = arith.constant 0 : i32
    %c0_i32_1 = arith.constant 0 : i32
    return %arg0, %c0_i32, %c0_i32_0 : i32, i32, i32
  }
  func.func @transform_8(%arg0: i32) -> (i32, i32, i32) {
    %c0_i32 = arith.constant 0 : i32
    %c0_i32_0 = arith.constant 0 : i32
    %c0_i32_1 = arith.constant 0 : i32
    return %arg0, %c0_i32, %c0_i32_0 : i32, i32, i32
  }
}

</mosaic_0001>

<bundles_post_ra>
// kernel: tpu_custom_call.1
= control target key start
LH: loop header
LB: loop body
LE: loop exit
PB: predicated region body
PF: predicated region fallthrough
CT: control target
= control target key end

     0   :  { %s3770_s0 = inlined_call_operand.vmem [shape: bf16[2,64,128], index: 0, kind: input, shape index: {}]   ;;  %s3771_s1 = inlined_call_operand.vmem [shape: bf16[2,64,128], index: 1, kind: input, shape index: {}]   ;;  %s3772_s2 = inlined_call_operand.hbm [shape: bf16[2,64,128], index: 2, kind: input, shape index: {}]   ;;  %s3773_s3 = inlined_call_operand.hbm [shape: bf16[2,64,128], index: 3, kind: input, shape index: {}]   ;;  %s3774_s4 = inlined_call_operand.hbm [shape: bf16[3,384,128], index: 4, kind: input, shape index: {}]   ;;  %s3775_s5 = inlined_call_operand.vmem [shape: f32[64,1], index: 5, kind: input, shape index: {}]   ;;  %s3776_s6 = inlined_call_operand.vmem [shape: f32[64,1], index: 6, kind: input, shape index: {}]   ;;  %s3777_s7 = inlined_call_operand.hbm [shape: bf16[2,64,128], index: 7, kind: output, shape index: {0}]   ;;  %s3778_s8 = inlined_call_operand.hbm [shape: f32[2,2,128], index: 8, kind: output, shape index: {1}]  }
   0x1   :  { %3791 = sst [smem:[#allocation23_spill]] %s3772_s2 }
   0x2   :  { %3792 = sst [smem:[#allocation24_spill]] %s3774_s4 }
   0x3   :  { %14 = vsyncpa [#allocation5], 0 }
   0x4   :  { %16 = vsyncpa [#allocation5 + $0x1], 0 }
   0x5   :  { %17 = vsyncpa [#allocation8], 0 }
   0x6   :  { %19 = vsyncpa [#allocation8 + $0x1], 0 }
   0x7   :  { %20 = vsyncpa [#allocation6], 0 }
   0x8   :  { %22 = vsyncpa [#allocation6 + $0x1], 0 }
   0x9   :  { %23 = vsyncpa [#allocation12], 0 }
   0xa   :  { %25 = vsyncpa [#allocation12 + $0x1], 0  ;;  %s3144_s27 = smov 0   ;;  %s3146_s28 = smov 0  }
   0xb   :  { %s3148_s29 = smov 0   ;;  %s3150_s30 = smov 0  }
   0xc LB: > { %3793 = sst [smem:[#allocation18_spill]] %s3075_s27  ;;  %s3165_s9 = sadd.s32 4294967295, %s3087_s30   ;;  %s3087_s30 = sphi %s3150_s30, %s3821_s30   ;;  %s3083_s29 = sphi %s3148_s29, %s3823_s29   ;;  %s3079_s28 = sphi %s3146_s28, %s3825_s28   ;;  %s3075_s27 = sphi %s3144_s27, %s3824_s27  }
   0xd   : > { %3794 = sst [smem:[#allocation19_spill]] %s3083_s29  ;;  %s2365_s10 = sadd.s32 4294967294, %s3087_s30  }
   0xe   : > { %p103_p0 = scmp.ne.s32.totalorder %s3079_s28, %s3075_s27  ;;  %p3779_p1 = scmp.eq.s32.totalorder %s3165_s9, 0 }
   0xf   : > { %p222_p3 = scmp.eq.s32.totalorder %s2365_s10, 1  ;;  %p2366_p5 = scmp.ge.s32.totalorder %s3087_s30, 1 }
  0x10   : > { %p3174_p4 = por %p3779_p1, %p103_p0  ;;  %p255_p7 = scmp.lt.s32.totalorder %s3087_s30, 3 }
  0x11   : > { %p3179_p6 = por %p222_p3, %p103_p0  ;;  %s3089_s14 = smov [#allocation9]  }
  0x12   : > { %s3795_s11 = scalar_select %p3174_p4, 1, 0 }
  0x13   : > { %s3796_s12 = scalar_select %p3179_p6, 1, 0 }
  0x14   : > { %p3184_p8 = pnand %p2366_p5, %p255_p7  ;;  %s267_s15 = sshll.u32 %s3089_s14, 4  ;;  %s3188_s15 = int_to_ptr.vmem [resolvable:$true] %s267_s15 }
  0x15   : > { %3797 = sst [smem:[#allocation20_spill]] %s3796_s12  ;;  %s3200_s17 = sadd.s32 1, %s3087_s30  }
  0x16   : > { %s3798_s13 = scalar_select %p3184_p8, 1, 0 }
  0x17   : > { %p2759_p9 = pneg %p3184_p8  ;;  %3800 = sst [smem:[#allocation21_spill]] %s3200_s17 }
  0x18   : > { %s90_s18 = sadd.s32 1, %s3083_s29  ;;  %s87_s19 = ssub.s32 %s3087_s30, %s3200_s17 }
  0x19   : > { %p3195_p11 = pnand %p2759_p9, %p3779_p1  ;;  %s3801_s4 = sld [smem:[#allocation24_spill]] }
  0x1b   : > { %p2895_p13 = pneg %p3195_p11 }
  0x1f   : > { %s2893_s22 = scalar_lea.hbm %s3801_s4, 9216 }
  0x20   : > { %p2894_p12 = scmp.ne.s32.totalorder %s3801_s4, %s2893_s22  ;;  %p2900_p5 = scmp.lt.u32.totalorder %s2893_s22, %s3801_s4 }
  0x22   : > { %p2896_p0 = pnand %p2895_p13, %p2894_p12 }
  0x24   : > { %p2897_p3 = pneg %p2896_p0 }
  0x26   : > { %p2902_p7 = pnand %p2900_p5, %p2897_p3 }
  0x28   : > { %2905 = shalt.err (!%p2902_p7)
}
  0x29   : > { %s2906_s10 = scalar_lea.vmem %s3188_s15, 9216  ;;  %p2914_p2 = scmp.lt.s32.totalorder %s3188_s15, %s3188_s15 }
  0x2a   : > { %p2907_p9 = scmp.ne.s32.totalorder %s3188_s15, %s2906_s10  ;;  %p2915_p6 = scmp.lt.s32.totalorder %s2906_s10, %s2906_s10 }
  0x2c   : > { %p2909_p10 = pnand %p2907_p9, %p2895_p13  ;;  %p2916_p4 = por %p2915_p6, %p2914_p2 }
  0x2e   : > { %p2910_p1 = pneg %p2909_p10 }
  0x30   : > { %p2917_p8 = pnand %p2916_p4, %p2910_p1 }
  0x32   : > { %2920 = shalt.err (!%p2917_p8)
}
  0x33   : > { %s3784_s14 = smov 64   ;;  %s3786_s20 = smov 4  }
  0x34   : > { %2762 = dma.hbm_to_vmem [thread:$0]  (!%p3195_p11), %s3801_s4, 9216, %s3188_s15, [#allocation8], %s3784_s14, %s3784_s14, %s3786_s20  }
  0x35   : > { %p88_p1 = scmp.eq.s32.totalorder %s87_s19, 0  ;;  %p97_p2 = scmp.ne.s32.totalorder %s3083_s29, %s3079_s28 }
  0x36   : > { %p98_p4 = scmp.eq.s32.totalorder %s3087_s30, 0  ;;  %p2778_p6 = scmp.lt.s32.totalorder %s3087_s30, 2 }
  0x37   : > { %s3234_s23 = scalar_select %p88_p1, %s3083_s29, %s90_s18  }
  0x38   : > { %p99_p8 = por %p98_p4, %p97_p2  ;;  %p3803_p10 = scmp.eq.s32.totalorder %s3165_s9, 1 }
  0x39   : > { %3802 = sst [smem:[#allocation22_spill]] %s3234_s23  ;;  %s303_s16 = sand.u32 1, %s3083_s29  }
  0x3a   : > { %p3238_p12 = por %p3803_p10, %p97_p2  ;;  %s2483_s25 = sshll.u32 %s3087_s30, 9 }
  0x3b   : > { %s3244_s26 = sshll.u32 %s303_s16, 5  ;;  %s3805_s2 = sld [smem:[#allocation23_spill]] }
  0x3c   : > { %s307_s18 = scalar_lea.vmem [#allocation4], %s3244_s26  ;;  %p3252_p11 = pnand %p2778_p6, %p99_p8 }
  0x3d   : > { %s314_s19 = sshll.u32 %s307_s18, 4  ;;  %s3261_s17 = scalar_lea.hbm %s3773_s3, %s2483_s25  ;;  %s3256_s19 = int_to_ptr.vmem [resolvable:$true] %s314_s19 }
  0x3e   : > { %s3263_s10 = scalar_lea.sflag [#allocation5], %s303_s16  ;;  %p2923_p0 = pneg %p3252_p11 }
  0x41   : > { %s3249_s15 = scalar_lea.hbm %s3805_s2, %s2483_s25  ;;  %s2926_s23 = scalar_lea.hbm %s3805_s2, 1024 }
  0x42   : > { %s2921_s20 = scalar_lea.hbm %s3249_s15, 512  ;;  %p2927_p7 = scmp.lt.u32.totalorder %s3249_s15, %s3805_s2 }
  0x43   : > { %p2922_p13 = scmp.ne.s32.totalorder %s3249_s15, %s2921_s20  ;;  %p2928_p9 = scmp.lt.u32.totalorder %s2926_s23, %s2921_s20 }
  0x44   : > { %p2930_p2 = scmp.lt.u32.totalorder %s2921_s20, %s3249_s15 }
  0x45   : > { %p2924_p3 = pnand %p2923_p0, %p2922_p13  ;;  %p2929_p1 = por %p2928_p9, %p2927_p7 }
  0x47   : > { %p2925_p5 = pneg %p2924_p3  ;;  %p2931_p4 = por %p2930_p2, %p2929_p1 }
  0x49   : > { %p2932_p6 = pnand %p2931_p4, %p2925_p5 }
  0x4b   : > { %2935 = shalt.err (!%p2932_p6)
}
  0x4c   : > { %s2936_s14 = scalar_lea.vmem %s3256_s19, 512  ;;  %s3092_s4 = smov [#allocation4]  }
  0x4d   : > { %p2937_p8 = scmp.ne.s32.totalorder %s3256_s19, %s2936_s14  ;;  %s2941_s16 = sshll.u32 %s3092_s4, 4  ;;  %s2942_s16 = int_to_ptr.vmem [resolvable:$false] %s2941_s16 }
  0x4e   : > { %s2943_s29 = scalar_lea.vmem %s2942_s16, 1024  ;;  %p2944_p3 = scmp.lt.s32.totalorder %s3256_s19, %s2942_s16 }
  0x4f   : > { %p2939_p10 = pnand %p2937_p8, %p2923_p0  ;;  %p2945_p7 = scmp.lt.s32.totalorder %s2943_s29, %s2936_s14 }
  0x51   : > { %p2940_p13 = pneg %p2939_p10  ;;  %p2946_p9 = por %p2945_p7, %p2944_p3 }
  0x53   : > { %p2947_p1 = pnand %p2946_p9, %p2940_p13 }
  0x55   : > { %2950 = shalt.err (!%p2947_p1)
}
  0x56   : > { %s3807_s12 = smov 4   ;;  %s3808_s20 = smov 64  }
  0x57   : > { %2766 = dma.hbm_to_vmem [thread:$0]  (!%p3252_p11), %s3249_s15, 512, %s3256_s19, %s3263_s10, %s3808_s20, %s3808_s20, %s3807_s12  }
  0x58   : > { %s328_s23 = scalar_lea.vmem [#allocation7], %s3244_s26  ;;  %s324_s22 = sand.u32 1, %s3087_s30  }
  0x59   : > { %s335_s25 = sshll.u32 %s328_s23, 4  ;;  %s3298_s18 = scalar_lea.sflag [#allocation8], %s324_s22  ;;  %s3296_s25 = int_to_ptr.vmem [resolvable:$true] %s335_s25 }
  0x5a   : > { %s2951_s14 = scalar_lea.hbm %s3261_s17, 512  ;;  %s2956_s29 = scalar_lea.hbm %s3773_s3, 1024 }
  0x5b   : > { %p2952_p5 = scmp.ne.s32.totalorder %s3261_s17, %s2951_s14  ;;  %p2957_p6 = scmp.lt.u32.totalorder %s3261_s17, %s3773_s3 }
  0x5c   : > { %p2958_p8 = scmp.lt.u32.totalorder %s2956_s29, %s2951_s14  ;;  %p2960_p13 = scmp.lt.u32.totalorder %s2951_s14, %s3261_s17 }
  0x5d   : > { %p2954_p2 = pnand %p2952_p5, %p2923_p0 }
  0x5e   : > { %p2959_p10 = por %p2958_p8, %p2957_p6 }
  0x5f   : > { %p2955_p4 = pneg %p2954_p2 }
  0x60   : > { %p2961_p3 = por %p2960_p13, %p2959_p10 }
  0x62   : > { %p2962_p7 = pnand %p2961_p3, %p2955_p4 }
  0x64   : > { %2965 = shalt.err (!%p2962_p7)
}
  0x65   : > { %s2966_s26 = scalar_lea.vmem %s3296_s25, 512  ;;  %s3093_s15 = smov [#allocation7]  }
  0x66   : > { %p2967_p9 = scmp.ne.s32.totalorder %s3296_s25, %s2966_s26  ;;  %s2971_s19 = sshll.u32 %s3093_s15, 4  ;;  %s2972_s19 = int_to_ptr.vmem [resolvable:$false] %s2971_s19 }
  0x67   : > { %s2973_s2 = scalar_lea.vmem %s2972_s19, 1024  ;;  %p2974_p2 = scmp.lt.s32.totalorder %s3296_s25, %s2972_s19 }
  0x68   : > { %p2969_p1 = pnand %p2967_p9, %p2923_p0  ;;  %p2975_p6 = scmp.lt.s32.totalorder %s2973_s2, %s2966_s26 }
  0x6a   : > { %p2970_p5 = pneg %p2969_p1  ;;  %p2976_p8 = por %p2975_p6, %p2974_p2 }
  0x6c   : > { %p2977_p10 = pnand %p2976_p8, %p2970_p5 }
  0x6e   : > { %2980 = shalt.err (!%p2977_p10)
}
  0x6f   : > { %2769 = dma.hbm_to_vmem [thread:$0]  (!%p3252_p11), %s3261_s17, 512, %s3296_s25, %s3298_s18, %s3808_s20, %s3808_s20, %s3807_s12  }
  0x70   : > { %p3809_p0 = scmp.ne.s32.totalorder %s3798_s13, 0 }
  0x71   : > { %s3330_s27 = sand.u32 (!%p3809_p0), 1, %s3079_s28   ;;  %p3810_p4 = scmp.ne.s32.totalorder (!%p3809_p0), %s3795_s11, 0 }
  0x72   : > { %347 = sbr.rel (%p3809_p0) target bundleno = 515 (0x203), region = 48  ;;  %s3333_s10 = sshll.u32 (!%p3809_p0), %s3330_s27, 5 }
  0x73   : > { %s350_s21 = scalar_lea.sflag (!%p3809_p0), [#allocation5], %s3330_s27  ;;  %s3337_s23 = scalar_lea.vmem (!%p3809_p0), [#allocation4], %s3333_s10 }
  0x79   : > { %3054 = dma.done.wait (%p3810_p4), %s350_s21, 512  }
  0x7a   : > { %3056 = vsyncadd (%p3810_p4), %s350_s21, 4294966784  ;;  %s358_s13 = sand.u32 1, %s3165_s9   ;;  %s3345_s12 = scalar_lea.vmem [#allocation7], %s3333_s10 }
  0x7b   : > { %s359_s17 = scalar_lea.sflag [#allocation8], %s358_s13 }
  0x7c   : > { %3058 = dma.done.wait (%p3810_p4), %s359_s17, 512  }
  0x7d   : > { %3060 = vsyncadd (%p3810_p4), %s359_s17, 4294966784  ;;  %p3811_p11 = scmp.eq.s32.totalorder %s3165_s9, 0 }
  0x7f   : > { %3062 = dma.done.wait (%p3811_p11), [#allocation8], 9216   ;;  %p3812_p13 = pmov %p3811_p11 }
  0x80   : > { %v3094_v0 = vmov 0   ;;  %v2821_v1 = vld [vmem:[#allocation9 + $0x100] sm:$0xff]   ;;  %v2824_v4 = vld [vmem:[#allocation9 + $0x108] sm:$0xff]   ;;  %v2827_v7 = vld [vmem:[#allocation9 + $0x110] sm:$0xff]   ;;  %p419_p3 = scmp.lt.s32.totalorder %s3165_s9, 1  ;;  %vm658_vm0 = vcmask 1043456  }
  0x81   : > { %3064 = vsyncadd (%p3812_p13), [#allocation8], 4294958080  ;;  %486 = vst [vmem:[#allocation2] sm:$0xf0] %v3094_v0  ;;  %2819 = vset.pattern.permute.xlu0 %v3094_v0  ;;  %2820 = vset.pattern.permute.xlu1 %v3094_v0  ;;  %v2822_v2 = vld [vmem:[#allocation9 + $0xc0] sm:$0xff]   ;;  %v2825_v5 = vld [vmem:[#allocation9 + $0xc8] sm:$0xff]  }
  0x82   : > { %538 = vst [vmem:[#allocation2 + $0x70] sm:$0xf] %v3094_v0  ;;  %2519 = vmatprep.subr.bf16.mxu0 %v2821_v1  ;;  %v2823_v3 = vld [vmem:[#allocation9 + $0x140] sm:$0xff]   ;;  %v2826_v6 = vld [vmem:[#allocation9 + $0x148] sm:$0xff]   ;;  %v2828_v8 = vld [vmem:[#allocation9 + $0xd0] sm:$0xff]   ;;  %s420_s11 = scalar_select %p419_p3, %s3165_s9, 1 }
  0x83   : > { %2520 = vmatpush3.bf16.msra.mxu0 %v2822_v2  ;;  %2675 = vmatprep.subr.bf16.mxu1 %v2823_v3  ;;  %v2829_v9 = vld [vmem:[#allocation9 + $0x150] sm:$0xff]   ;;  %v2830_v10 = vld [vmem:[#allocation9 + $0x118] sm:$0xff]   ;;  %v2833_v13 = vld [vmem:[#allocation9 + $0x120] sm:$0xff]   ;;  %vm540_vm1 = vsmask.f32 7950  ;;  %vm539_vm2 = vcmask 1043459  }
  0x84   : > { %2676 = vmatpush3.bf16.msra.mxu1 %v2823_v3  ;;  %2521 = vmatprep.subr.bf16.mxu0 %v2824_v4  ;;  %v2831_v11 = vld [vmem:[#allocation9 + $0xd8] sm:$0xff]   ;;  %v2835_v14 = vld [vmem:[#allocation9 + $0x160] sm:$0xff]   ;;  %v2836_v16 = vld [vmem:[#allocation9 + $0x128] sm:$0xff]   ;;  %s2485_s20 = sshll.u32 %s420_s11, 5  ;;  %vm552_vm4 = vsmask.f32 4352 }
  0x85   : > { %2677 = vmatprep.subr.bf16.mxu1 %v2826_v6  ;;  %v2832_v12 = vld [vmem:[#allocation9 + $0x158] sm:$0xff]   ;;  %v2834_v15 = vld [vmem:[#allocation9 + $0xe0] sm:$0xff]   ;;  %v2838_v17 = vld [vmem:[#allocation9 + $0x168] sm:$0xff]   ;;  %s3360_s18 = scalar_lea.vmem %s3770_s0, %s2485_s20  ;;  %s3365_s16 = scalar_lea.vmem %s3771_s1, %s2485_s20  ;;  %vm551_vm5 = vcmask 1044484   ;;  %vm1597_vm6 = vsmask.f32 3328 }
  0x86   : > { %v2837_v18 = vld [vmem:[#allocation9 + $0xe8] sm:$0xff]   ;;  %v2839_v19 = vld [vmem:[#allocation9 + $0x130] sm:$0xff]   ;;  %v2842_v22 = vld [vmem:[#allocation9 + $0x138] sm:$0xff]   ;;  %s2173_s26 = scalar_lea.sflag [#allocation6], %s3330_s27  ;;  %s3095_s19 = smov [#allocation10]  }
  0x87   : > { %2522 = vmatpush3.bf16.msra.mxu0 %v2825_v5  ;;  %v2840_v20 = vld [vmem:[#allocation9 + $0xf0] sm:$0xff]   ;;  %v2844_v23 = vld [vmem:[#allocation9 + $0x178] sm:$0xff]   ;;  %v430_v24 = vld [vmem:[%s3360_s18] sm:$0xf]  ;;  %s2985_s2 = sshll.u32 %s3095_s19, 4  ;;  %s2986_s2 = int_to_ptr.vmem [resolvable:$false] %s2985_s2 }
  0x88   : > { %2523 = vmatprep.subr.bf16.mxu0 %v2827_v7  ;;  %2678 = vmatpush3.bf16.msra.mxu1 %v2826_v6  ;;  %v2841_v21 = vld [vmem:[#allocation9 + $0x170] sm:$0xff]   ;;  %v431_v25 = vld [vmem:[%s3360_s18 + $0x4] sm:$0xf]  ;;  %v2843_v27 = vld [vmem:[#allocation9 + $0xf8] sm:$0xff]   ;;  %s2987_s21 = scalar_lea.vmem %s2986_s2, 1024 }
  0x89   : > { %2679 = vmatprep.subr.bf16.mxu1 %v2829_v9  ;;  %v432_v26 = vld [vmem:[%s3360_s18 + $0x8] sm:$0xf]  ;;  %v438_v28 = vld [vmem:[%s3365_s16] sm:$0xf]  ;;  %v439_v29 = vld [vmem:[%s3365_s16 + $0x4] sm:$0xf] }
  0x8a   : > { %v440_v30 = vld [vmem:[%s3365_s16 + $0x8] sm:$0xf]  ;;  %v446_v31 = vmax.bf16 %v438_v28, %v430_v24  ;;  %v447_v32 = vmax.bf16 %v439_v29, %v431_v25  ;;  %v454_v34 = vld [vmem:[%s3337_s23] sm:$0xf]  ;;  %v455_v35 = vld [vmem:[%s3337_s23 + $0x4] sm:$0xf] }
  0x8b   : > { %2524 = vmatpush3.bf16.msra.mxu0 %v2828_v8  ;;  %v448_v33 = vmax.bf16 %v440_v30, %v432_v26  ;;  %v456_v36 = vld [vmem:[%s3337_s23 + $0x8] sm:$0xf]  ;;  %v462_v37 = vld [vmem:[%s3345_s12] sm:$0xf]  ;;  %v463_v38 = vld [vmem:[%s3345_s12 + $0x4] sm:$0xf] }
  0x8c   : > { %2525 = vmatprep.subr.bf16.mxu0 %v2830_v10  ;;  %2680 = vmatpush3.bf16.msra.mxu1 %v2829_v9  ;;  %v464_v39 = vld [vmem:[%s3345_s12 + $0x8] sm:$0xf]  ;;  %v470_v40 = vmax.bf16 %v462_v37, %v454_v34  ;;  %v471_v41 = vmax.bf16 %v463_v38, %v455_v35  ;;  %v2845_v43 = vld [vmem:[#allocation9 + $0x40] sm:$0xff]   ;;  %v433_v44 = vld [vmem:[%s3360_s18 + $0xc] sm:$0xf] }
  0x8d   : > { %2681 = vmatprep.subr.bf16.mxu1 %v2832_v12  ;;  %v472_v42 = vmax.bf16 %v464_v39, %v456_v36  ;;  %v441_v45 = vld [vmem:[%s3365_s16 + $0xc] sm:$0xf]  ;;  %v457_v50 = vld [vmem:[%s3337_s23 + $0xc] sm:$0xf]  ;;  %v434_v53 = vld [vmem:[%s3360_s18 + $0x10] sm:$0xf] }
  0x8e   : > { %v478_v46 = vmax.bf16 %v470_v40, %v446_v31  ;;  %v479_v47 = vmax.bf16 %v471_v41, %v447_v32  ;;  %v449_v49 = vmax.bf16 %v441_v45, %v433_v44  ;;  %v465_v51 = vld [vmem:[%s3345_s12 + $0xc] sm:$0xf]  ;;  %v435_v58 = vld [vmem:[%s3360_s18 + $0x14] sm:$0xf]  ;;  %v442_v59 = vld [vmem:[%s3365_s16 + $0x10] sm:$0xf] }
  0x8f   : > { %2526 = vmatpush3.bf16.msra.mxu0 %v2831_v11  ;;  %v480_v48 = vmax.bf16 %v472_v42, %v448_v33  ;;  %v473_v52 = vmax.bf16 %v465_v51, %v457_v50  ;;  %v443_v60 = vld [vmem:[%s3365_s16 + $0x14] sm:$0xf]  ;;  %v450_v62 = vmax.bf16 %v442_v59, %v434_v53  ;;  %v458_v0 = vld [vmem:[%s3337_s23 + $0x10] sm:$0xf]  ;;  %v459_v1 = vld [vmem:[%s3337_s23 + $0x14] sm:$0xf] }
  0x90   : > { %2527 = vmatprep.subr.bf16.mxu0 %v2833_v13  ;;  %2682 = vmatpush3.bf16.msra.mxu1 %v2832_v12  ;;  %v2389_v54 = vcombine.low %v478_v46, %v478_v46  ;;  %v3386_v56 = vcombine.low %v478_v46, %v479_v47  ;;  %v2394_v57 = vcombine.low %v479_v47, %v479_v47  ;;  %v466_v2 = vld [vmem:[%s3345_s12 + $0x10] sm:$0xf]  ;;  %v579_v3 = vld [vmem:[#allocation2] sm:$0xf0]  ;;  %v467_v4 = vld [vmem:[%s3345_s12 + $0x14] sm:$0xf] }
  0x91   : > { %2683 = vmatprep.subr.bf16.mxu1 %v2835_v14  ;;  %v3384_v55 = vcombine.low %v479_v47, %v480_v48  ;;  %v481_v61 = vmax.bf16 %v473_v52, %v449_v49  ;;  %v451_v63 = vmax.bf16 %v443_v60, %v435_v58  ;;  %v474_v5 = vmax.bf16 %v466_v2, %v458_v0  ;;  %v2847_v8 = vld [vmem:[#allocation9 + $0x80] sm:$0xff]   ;;  %v2848_v26 = vld [vmem:[#allocation9 + $0x48] sm:$0xff]   ;;  %v2851_v34 = vld [vmem:[#allocation9 + $0x50] sm:$0xff]  }
  0x92   : > { %525 = vst [vmem:[#allocation2 + $0x8] sm:$0xf0] %v2389_v54  ;;  %534 = vst [vmem:[#allocation2 + $0x10] sm:$0xf0] %v2394_v57  ;;  %v475_v7 = vmax.bf16 %v467_v4, %v459_v1  ;;  %v659_v11 = vrot.slane %v579_v3, 4  ;;  %v660_v13 = vrot.slane %v3386_v56, 4 }
  0x93   : > { %2528 = vmatpush3.bf16.msra.mxu0 %v2834_v15  ;;  %v3395_v6 = vcombine.low %v480_v48, %v481_v61  ;;  %v482_v9 = vmax.bf16 %v474_v5, %v450_v62  ;;  %v2850_v29 = vld [vmem:[#allocation9 + $0x88] sm:$0xff]   ;;  %v436_v31 = vld [vmem:[%s3360_s18 + $0x18] sm:$0xf]  ;;  %v1069_v32 = vshrl.u32 %v3384_v55, 16  ;;  %v460_v36 = vld [vmem:[%s3337_s23 + $0x18] sm:$0xf] }
  0x94   : > { %2529 = vmatprep.subr.bf16.mxu0 %v2836_v16  ;;  %2684 = vmatpush3.bf16.msra.mxu1 %v2835_v14  ;;  %v483_v10 = vmax.bf16 %v475_v7, %v451_v63  ;;  %v663_v16 = vrot.slane %v3384_v55, 4  ;;  %v661_v24 = vsel %vm658_vm0, %v659_v11, %v660_v13  ;;  %v2849_v30 = vld [vmem:[#allocation9 + $0x8] sm:$0xff]   ;;  %v444_v35 = vld [vmem:[%s3365_s16 + $0x18] sm:$0xf]  ;;  %v468_v37 = vld [vmem:[%s3345_s12 + $0x18] sm:$0xf] }
  0x95   : > { %2685 = vmatprep.subr.bf16.mxu1 %v2838_v17  ;;  %v3397_v12 = vcombine.low %v481_v61, %v482_v9  ;;  %v666_v14 = vrot.slane %v3395_v6, 4  ;;  %v2853_v38 = vld [vmem:[#allocation9 + $0x90] sm:$0xff]   ;;  %v452_v39 = vmax.bf16 %v444_v35, %v436_v31  ;;  %v476_v40 = vmax.bf16 %v468_v37, %v460_v36  ;;  %v437_v42 = vld [vmem:[%s3360_s18 + $0x1c] sm:$0xf]  ;;  %v461_v44 = vld [vmem:[%s3337_s23 + $0x1c] sm:$0xf] }
  0x96   : > { %v3401_v15 = vcombine.low %v482_v9, %v483_v10  ;;  %v1072_v41 = vshll.u32 %v3384_v55, 16  ;;  %v469_v47 = vld [vmem:[%s3345_s12 + $0x1c] sm:$0xf]  ;;  %v2852_v48 = vld [vmem:[#allocation9 + $0x10] sm:$0xff]   ;;  %v3431_v51 = vrot.slane %v1069_v32, 3  ;;  %v1052_v62 = vshrl.u32 %v3386_v56, 16  ;;  %vm3446_vm3 = vmand %vm539_vm2, %vm540_vm1 }
  0x97   : > { %2530 = vmatpush3.bf16.msra.mxu0 %v2837_v18  ;;  %v484_v45 = vmax.bf16 %v476_v40, %v452_v39  ;;  %v2854_v49 = vld [vmem:[#allocation9 + $0x58] sm:$0xff]   ;;  %v477_v50 = vmax.bf16 %v469_v47, %v461_v44  ;;  %v669_v52 = vsel %vm658_vm0, %v660_v13, %v666_v14  ;;  %v1055_v3 = vshll.u32 %v3386_v56, 16  ;;  %v2863_v36 = vld [vmem:[#allocation9 + $0x70] sm:$0xff]   ;;  %v2885_v55 = vld [vmem:[#allocation9 + $0x1a8] sm:$0xff]   ;;  %s3676_s18 = scalar_lea.vmem [#allocation10], %s3333_s10  ;;  %s2495_s10 = sshll.u32 %s3165_s9, 9 }
  0x98   : > { %2531 = vmatprep.subr.bf16.mxu0 %v2839_v19  ;;  %2686 = vmatpush3.bf16.msra.mxu1 %v2838_v17  ;;  %v2846_v19 = vld [vmem:[#allocation9] sm:$0xff]   ;;  %v593_v54 = vld [vmem:[#allocation2 + $0x70] sm:$0xf]  ;;  %v3438_v60 = vrot.slane %v1072_v41, 4  ;;  %v1086_v7 = vshrl.u32 %v3395_v6, 16  ;;  %v3458_v11 = vrot.slane %v1052_v62, 3  ;;  %vm3559_vm7 = vmand %vm551_vm5, %vm552_vm4  ;;  %s3692_s29 = scalar_lea.hbm %s3777_s7, %s2495_s10 }
  0x99   : > { %2687 = vmatprep.subr.bf16.mxu1 %v2841_v21  ;;  %v580_v17 = vld [vmem:[#allocation2 + $0x8] sm:$0xf0]  ;;  %v581_v18 = vld [vmem:[#allocation2 + $0x10] sm:$0xf0]  ;;  %v3434_v53 = vcombine.low %v483_v10, %v484_v45  ;;  %v2388_v57 = vcombine.low %v484_v45, %v484_v45  ;;  %v684_v0 = vrot.slane %v593_v54, 4  ;;  %v2859_v10 = vld [vmem:[#allocation9 + $0xa0] sm:$0xff]  }
  0x9a   : > { %v2856_v58 = vld [vmem:[#allocation9 + $0x98] sm:$0xff]   ;;  %v2865_v39 = vld [vmem:[#allocation9 + $0xb0] sm:$0xff]   ;;  %v1116_v40 = vshll.u32 %v3401_v15, 16  ;;  %v1107_v44 = vshll.u32 %v3397_v12, 16  ;;  %s2191_s14 = sshll.u32 %s3676_s18, 4  ;;  %s3694_s14 = int_to_ptr.vmem [resolvable:$true] %s2191_s14 }
  0x9b   : > { %2532 = vmatpush3.bf16.msra.mxu0 %v2840_v20  ;;  %v3405_v20 = vrot.slane %v3401_v15, 4  ;;  %v676_v61 = vrot.slane %v3434_v53, 4  ;;  %512 = vst [vmem:[#allocation2 + $0x60] sm:$0xf] %v2388_v57  ;;  %v2855_v4 = vld [vmem:[#allocation9 + $0x18] sm:$0xff]   ;;  %v1075_v57 = vor.u32 %v3438_v60, %v3431_v51  ;;  %v1134_v51 = vshll.u32 %v3434_v53, 16  ;;  %p2988_p5 = scmp.lt.s32.totalorder %s3694_s14, %s2986_s2 }
  0x9c   : > { %2533 = vmatprep.subr.bf16.mxu0 %v2842_v22  ;;  %2688 = vmatpush3.bf16.msra.mxu1 %v2841_v21  ;;  %v670_v21 = vrot.slane %v3397_v12, 4  ;;  %v662_v22 = vrot.slane %v580_v17, 4  ;;  %v3465_v17 = vrot.slane %v1055_v3, 4  ;;  %v1118_v54 = vrot.slane %v1116_v40, 4  ;;  %v564_v56 = vld [vmem:[%s3775_s5 + $0x8] sm:$0xff]  ;;  %s2981_s15 = scalar_lea.vmem %s3694_s14, 512 }
  0x9d   : > { %2689 = vmatprep.subr.bf16.mxu1 %v2844_v23  ;;  %v3411_v25 = vsel %vm658_vm0, %v666_v14, %v3405_v20  ;;  %p2982_p7 = scmp.ne.s32.totalorder %s3694_s14, %s2981_s15  ;;  %p2989_p2 = scmp.lt.s32.totalorder %s2987_s21, %s2981_s15 }
  0x9e   : > { %v671_v33 = vsel %vm658_vm0, %v663_v16, %v670_v21  ;;  %v677_v5 = vsel %vm658_vm0, %v670_v21, %v676_v61  ;;  %v2862_v21 = vld [vmem:[#allocation9 + $0xa8] sm:$0xff]  }
  0x9f   : > { %2534 = vmatpush3.bf16.msra.mxu0 %v2843_v27  ;;  %v664_v27 = vsel %vm658_vm0, %v662_v22, %v663_v16  ;;  %p2983_p9 = pnand %p2982_p7, %p3238_p12  ;;  %p2990_p6 = por %p2989_p2, %p2988_p5 }
  0xa0   : > { %2571 = vmatprep.subr.bf16.mxu0 %v2845_v43  ;;  %2690 = vmatpush3.bf16.msra.mxu1 %v2844_v23  ;;  %v665_v23 = vrot.slane %v581_v18, 4  ;;  %v445_v43 = vld [vmem:[%s3365_s16 + $0x1c] sm:$0xf]  ;;  %v2860_v18 = vld [vmem:[#allocation9 + $0x68] sm:$0xff]  }
  0xa1   : > { %2699 = vmatprep.subr.bf16.mxu1 %v2847_v8  ;;  %874 = vmatprep.mubr.bf16.mxu0 %v664_v27  ;;  %v453_v46 = vmax.bf16 %v445_v43, %v437_v42  ;;  %v545_v27 = vld [vmem:[#allocation2 + $0x8] sm:$0x8]  ;;  %p2984_p1 = pneg %p2983_p9 }
  0xa2   : > { %v667_v28 = vsel %vm658_vm0, %v665_v23, %v666_v14  ;;  %875 = vmatmul.mubr.bf16.vlgmr.msra.gmra.mrb[0].mxu0 %v661_v24  ;;  %v2858_v14 = vld [vmem:[#allocation9 + $0x20] sm:$0xff]   ;;  %v591_v22 = vld [vmem:[#allocation2 + $0x60] sm:$0xf]  ;;  %v1089_v23 = vshll.u32 %v3395_v6, 16 }
  0xa3   : > { %2691 = vmatprep.mubr.bf16.mxu1 %v667_v28  ;;  %2572 = vmatpush3.bf16.msra.mxu0 %v2846_v19  ;;  %v485_v59 = vmax.bf16 %v477_v50, %v453_v46  ;;  %v3469_v19 = vrot.slane %v1086_v7, 3  ;;  %v2861_v24 = vld [vmem:[#allocation9 + $0x28] sm:$0xff]   ;;  %v2866_v46 = vld [vmem:[#allocation9 + $0x78] sm:$0xff]   ;;  %p2991_p8 = pnand %p2990_p6, %p2984_p1 }
  0xa4   : > { %2692 = vmatmul.mubr.bf16.vlgmr.msra.gmra.mrb[0].mxu1 %v3411_v25  ;;  %2573 = vmatprep.subr.bf16.mxu0 %v2848_v26  ;;  %v680_v26 = vrot.slane %v591_v22, 4  ;;  %v542_v28 = vld [vmem:[#allocation2] sm:$0x8]  ;;  %v1091_v43 = vrot.slane %v1089_v23, 4  ;;  %v2867_v50 = vld [vmem:[#allocation9 + $0x38] sm:$0xff]  }
  0xa5   : > { %2700 = vmatpush3.bf16.msra.mxu1 %v2847_v8  ;;  %882 = vmatprep.mubr.bf16.mxu0 %v671_v33  ;;  %v3442_v63 = vcombine.low %v484_v45, %v485_v59  ;;  %v2393_v1 = vcombine.low %v485_v59, %v485_v59  ;;  %v2857_v8 = vld [vmem:[#allocation9 + $0x60] sm:$0xff]   ;;  %v543_v31 = vsel %vm3446_vm3, 0, %v542_v28 }
  0xa6   : > { %2701 = vmatprep.subr.bf16.mxu1 %v2850_v29  ;;  %544 = vst [vmem:[#allocation2] sm:$0x8] %v543_v31  ;;  %v681_v45 = vsel %vm658_vm0, %v3405_v20, %v680_v26  ;;  %v2869_v59 = vld [vmem:[#allocation9 + $0x1c0] sm:$0xff]  }
  0xa7   : > { %2574 = vmatpush3.bf16.msra.mxu0 %v2849_v30  ;;  %v678_v9 = vrot.slane %v3442_v63, 4  ;;  %529 = vst [vmem:[#allocation2 + $0x68] sm:$0xf] %v2393_v1  ;;  %v546_v30 = vsel %vm3446_vm3, 0, %v545_v27  ;;  %v2870_v28 = vld [vmem:[#allocation9 + $0x180] sm:$0xff]  }
  0xa8   : > { %2575 = vmatprep.subr.bf16.mxu0 %v2851_v34  ;;  %547 = vst [vmem:[#allocation2 + $0x8] sm:$0x8] %v546_v30  ;;  %v548_v34 = vld [vmem:[#allocation2 + $0x10] sm:$0x8] }
  0xa9   : > { %2702 = vmatpush3.bf16.msra.mxu1 %v2850_v29  ;;  %v679_v13 = vsel %vm658_vm0, %v3405_v20, %v678_v9  ;;  %v685_v16 = vsel %vm658_vm0, %v678_v9, %v684_v0  ;;  %v1113_v29 = vshrl.u32 %v3401_v15, 16  ;;  %v549_v37 = vsel %vm3446_vm3, 0, %v548_v34  ;;  %v2872_v34 = vld [vmem:[#allocation9 + $0x1c8] sm:$0xff]   ;;  %v2892_v15 = vld [vmem:[#allocation9 + $0x238] sm:$0xff]  }
  0xaa   : > { %2703 = vmatprep.subr.bf16.mxu1 %v2853_v38  ;;  %883 = vmatmul.mubr.bf16.gmra.mrb[4].mxu0 %v669_v52  ;;  %550 = vst [vmem:[#allocation2 + $0x10] sm:$0x8] %v549_v37  ;;  %v2868_v52 = vld [vmem:[#allocation9 + $0xb8] sm:$0xff]   ;;  %v1140_v37 = vshrl.u32 %v3442_v63, 16 }
  0xab   : > { %2576 = vmatpush3.bf16.msra.mxu0 %v2852_v48  ;;  %890 = vmatprep.mubr.bf16.mxu0 %v677_v5  ;;  %v1115_v47 = vrot.slane %v1113_v29, 3  ;;  %v1058_v5 = vor.u32 %v3465_v17, %v3458_v11  ;;  %v1092_v11 = vor.u32 %v1091_v43, %v3469_v19  ;;  %v1136_v19 = vrot.slane %v1134_v51, 4  ;;  %v994_v43 = vld [vmem:[#allocation2 + $0x70] sm:$0xf] }
  0xac   : > { %2577 = vmatprep.subr.bf16.mxu0 %v2854_v49  ;;  %2695 = vmatprep.mubr.bf16.mxu1 %v679_v13  ;;  %v1109_v49 = vrot.slane %v1107_v44, 4 }
  0xad   : > { %2704 = vmatpush3.bf16.msra.mxu1 %v2853_v38  ;;  %v2864_v38 = vld [vmem:[#allocation9 + $0x30] sm:$0xff]   ;;  %v3505_v17 = vor.u32 %v1118_v54, %v1115_v47  ;;  %v1142_v47 = vrot.slane %v1140_v37, 3 }
  0xae   : > { %2705 = vmatprep.subr.bf16.mxu1 %v2856_v58  ;;  %2696 = vmatmul.mubr.bf16.gmra.mrb[4].mxu1 %v685_v16  ;;  %v592_v33 = vld [vmem:[#allocation2 + $0x68] sm:$0xf] }
  0xaf   : > { %2578 = vmatpush3.bf16.msra.mxu0 %v2855_v4  ;;  %v682_v35 = vrot.slane %v592_v33, 4  ;;  %v981_v20 = vld [vmem:[#allocation2 + $0x8] sm:$0xf8]  ;;  %v2871_v4 = vld [vmem:[#allocation9 + $0x200] sm:$0xff]  }
  0xb0   : > { %2579 = vmatprep.subr.bf16.mxu0 %v2857_v8  ;;  %v1064_v0 = vshll.u32 %v981_v20, 16  ;;  %v2876_v54 = vld [vmem:[#allocation9 + $0x190] sm:$0xff]  }
  0xb1   : > { %2706 = vmatpush3.bf16.msra.mxu1 %v2856_v58  ;;  %v683_v42 = vsel %vm658_vm0, %v676_v61, %v682_v35  ;;  %v980_v58 = vld [vmem:[#allocation2] sm:$0xf8]  ;;  %v1061_v61 = vshrl.u32 %v981_v20, 16  ;;  %v982_v8 = vld [vmem:[#allocation2 + $0x10] sm:$0xf8] }
  0xb2   : > { %2707 = vmatprep.subr.bf16.mxu1 %v2859_v10  ;;  %891 = vmatmul.mubr.bf16.gmra.mrb[8].mxu0 %v3411_v25  ;;  %v1104_v25 = vshrl.u32 %v3397_v12, 16  ;;  %v1044_v1 = vshrl.u32 %v980_v58, 16  ;;  %v1047_v2 = vshll.u32 %v980_v58, 16  ;;  %v1066_v13 = vrot.slane %v1064_v0, 4 }
  0xb3   : > { %2580 = vmatpush3.bf16.msra.mxu0 %v2858_v14  ;;  %898 = vmatprep.mubr.bf16.mxu0 %v683_v42  ;;  %v1063_v60 = vrot.slane %v1061_v61, 3  ;;  %v2873_v42 = vld [vmem:[#allocation9 + $0x188] sm:$0xff]   ;;  %v1102_v0 = vsel %vm552_vm4, %v1058_v5, %v1092_v11  ;;  %v1673_v12 = vrot.slane %v1116_v40, 5  ;;  %v1697_v40 = vrot.slane %v1140_v37, 4  ;;  %v573_v37 = vld [vmem:[%s3776_s6 + $0x10] sm:$0xff] }
  0xb4   : > { %2581 = vmatprep.subr.bf16.mxu0 %v2860_v18  ;;  %v1106_v48 = vrot.slane %v1104_v25, 3  ;;  %v1046_v14 = vrot.slane %v1044_v1, 3  ;;  %v1049_v16 = vrot.slane %v1047_v2, 4  ;;  %v1078_v18 = vshrl.u32 %v982_v8, 16  ;;  %v993_v2 = vld [vmem:[#allocation2 + $0x68] sm:$0xf] }
  0xb5   : > { %2708 = vmatpush3.bf16.msra.mxu1 %v2859_v10  ;;  %v1131_v10 = vshrl.u32 %v3434_v53, 16  ;;  %v1067_v22 = vor.u32 %v1066_v13, %v1063_v60  ;;  %v2878_v60 = vld [vmem:[#allocation9 + $0x1d8] sm:$0xff]   ;;  %v574_v53 = vld [vmem:[%s3776_s6 + $0x18] sm:$0xff] }
  0xb6   : > { %2709 = vmatprep.subr.bf16.mxu1 %v2862_v21  ;;  %v3500_v9 = vor.u32 %v1109_v49, %v1106_v48  ;;  %v1080_v26 = vrot.slane %v1078_v18, 3  ;;  %v1167_v49 = vshrl.u32 %v994_v43, 16  ;;  %v2879_v18 = vld [vmem:[#allocation9 + $0x198] sm:$0xff]  }
  0xb7   : > { %2582 = vmatpush3.bf16.msra.mxu0 %v2861_v24  ;;  %v1050_v24 = vor.u32 %v1049_v16, %v1046_v14  ;;  %v1133_v30 = vrot.slane %v1131_v10, 3  ;;  %v1076_v31 = vsel %vm552_vm4, %v1067_v22, %v1075_v57  ;;  %v1158_v14 = vshrl.u32 %v993_v2, 16  ;;  %v2880_v22 = vld [vmem:[#allocation9 + $0x218] sm:$0xff]  }
  0xb8   : > { %2583 = vmatprep.subr.bf16.mxu0 %v2863_v36  ;;  %v1111_v35 = vsel %vm552_vm4, %v1075_v57, %v3500_v9  ;;  %v1169_v58 = vrot.slane %v1167_v49, 3  ;;  %v1161_v16 = vshll.u32 %v993_v2, 16  ;;  %v1609_v2 = vrot.slane %v1052_v62, 4  ;;  %v560_v62 = vld [vmem:[#allocation2 + $0x70] sm:$0x10] }
  0xb9   : > { %2710 = vmatpush3.bf16.msra.mxu1 %v2862_v21  ;;  %v1081_v21 = vshll.u32 %v982_v8, 16  ;;  %v1059_v33 = vsel %vm552_vm4, %v1050_v24, %v1058_v5  ;;  %v1137_v20 = vor.u32 %v1136_v19, %v1133_v30  ;;  %v992_v8 = vld [vmem:[#allocation2 + $0x60] sm:$0xf]  ;;  %v1160_v24 = vrot.slane %v1158_v14, 3  ;;  %v2882_v30 = vld [vmem:[#allocation9 + $0x1a0] sm:$0xff]   ;;  %v577_v14 = vld [vmem:[%s3776_s6 + $0x30] sm:$0xff] }
  0xba   : > { %2711 = vmatprep.subr.bf16.mxu1 %v2865_v39  ;;  %899 = vmatmul.mubr.bf16.gmra.mrb[12].mxu0 %v681_v45 }
  0xbb   : > { %2584 = vmatpush3.bf16.msra.mxu0 %v2864_v38  ;;  %v1083_v27 = vrot.slane %v1081_v21, 4  ;;  %1363 = vmatprep.mubr.bf16.mxu0 %v1076_v31  ;;  %v1143_v38 = vshll.u32 %v3442_v63, 16  ;;  %v1149_v21 = vshrl.u32 %v992_v8, 16  ;;  %v2883_v31 = vld [vmem:[#allocation9 + $0x220] sm:$0xff]   ;;  %v567_v63 = vld [vmem:[%s3775_s5 + $0x20] sm:$0xff] }
  0xbc   : > { %2585 = vmatprep.subr.bf16.mxu0 %v2866_v46  ;;  %v2874_v46 = vld [vmem:[#allocation9 + $0x208] sm:$0xff]  }
  0xbd   : > { %2712 = vmatpush3.bf16.msra.mxu1 %v2865_v39  ;;  %v1084_v36 = vor.u32 %v1083_v27, %v1080_v26  ;;  %v3519_v39 = vsel %vm552_vm4, %v1092_v11, %v3505_v17  ;;  %v1145_v48 = vrot.slane %v1143_v38, 4  ;;  %v1152_v26 = vshll.u32 %v992_v8, 16  ;;  %v2881_v27 = vld [vmem:[#allocation9 + $0x1e0] sm:$0xff]   ;;  %v2888_v8 = vld [vmem:[#allocation9 + $0x1b0] sm:$0xff]  }
  0xbe   : > { %2713 = vmatprep.subr.bf16.mxu1 %v2868_v52 }
  0xbf   : > { %2586 = vmatpush3.bf16.msra.mxu0 %v2867_v50  ;;  %v1093_v45 = vsel %vm552_vm4, %v1084_v36, %v1092_v11  ;;  %v2875_v50 = vld [vmem:[#allocation9 + $0x1d0] sm:$0xff]   ;;  %v1146_v57 = vor.u32 %v1145_v48, %v1142_v47  ;;  %v1163_v11 = vrot.slane %v1161_v16, 4  ;;  %v1533_v36 = vld [vmem:[#allocation2] sm:$0xf0]  ;;  %v1629_v47 = vrot.slane %v1072_v41, 5 }
  0xc0   : > { %2623 = vmatprep.subr.bf16.mxu0 %v2869_v59  ;;  %2715 = vmatprep.mubr.bf16.mxu1 %v1093_v45  ;;  %v2877_v59 = vld [vmem:[#allocation9 + $0x210] sm:$0xff]   ;;  %v2886_v41 = vld [vmem:[#allocation9 + $0x228] sm:$0xff]  }
  0xc1   : > { %2714 = vmatpush3.bf16.msra.mxu1 %v2868_v52  ;;  %v1170_v52 = vshll.u32 %v994_v43, 16  ;;  %v1147_v1 = vsel %vm552_vm4, %v3505_v17, %v1146_v57  ;;  %v2884_v43 = vld [vmem:[#allocation9 + $0x1e8] sm:$0xff]  }
  0xc2   : > { %2723 = vmatprep.subr.bf16.mxu1 %v2871_v4  ;;  %1364 = vmatmul.mubr.bf16.vlgmr.msra.gmra.mrb[16].mxu0 %v1059_v33  ;;  %v1154_v33 = vrot.slane %v1152_v26, 4  ;;  %v1661_v26 = vrot.slane %v1104_v25, 4 }
  0xc3   : > { %2624 = vmatpush3.bf16.msra.mxu0 %v2870_v28  ;;  %1371 = vmatprep.mubr.bf16.mxu0 %v1111_v35  ;;  %v1172_v61 = vrot.slane %v1170_v52, 4  ;;  %v1164_v28 = vor.u32 %v1163_v11, %v1160_v24  ;;  %v554_v24 = vld [vmem:[#allocation2 + $0x60] sm:$0x10]  ;;  %v2890_v11 = vld [vmem:[#allocation9 + $0x1f8] sm:$0xff]  }
  0xc4   : > { %2625 = vmatprep.subr.bf16.mxu0 %v2872_v34  ;;  %2716 = vmatmul.mubr.bf16.vlgmr.msra.gmra.mrb[8].mxu1 %v3519_v39  ;;  %v1534_v34 = vld [vmem:[#allocation2 + $0x8] sm:$0xf0] }
  0xc5   : > { %2724 = vmatpush3.bf16.msra.mxu1 %v2871_v4  ;;  %2719 = vmatprep.mubr.bf16.mxu1 %v1147_v1  ;;  %v1173_v13 = vor.u32 %v1172_v61, %v1169_v58  ;;  %v1138_v4 = vsel %vm552_vm4, %v3500_v9, %v1137_v20  ;;  %v1151_v9 = vrot.slane %v1149_v21, 3  ;;  %v1616_v35 = vshrl.u32 %v1534_v34, 16  ;;  %v2889_v21 = vld [vmem:[#allocation9 + $0x230] sm:$0xff]  }
  0xc6   : > { %2725 = vmatprep.subr.bf16.mxu1 %v2874_v46  ;;  %v1619_v19 = vshll.u32 %v1534_v34, 16  ;;  %v1165_v45 = vsel %vm552_vm4, %v1137_v20, %v1164_v28  ;;  %v1602_v58 = vshll.u32 %v1533_v36, 16  ;;  %v2891_v34 = vld [vmem:[#allocation9 + $0x1b8] sm:$0xff]  }
  0xc7   : > { %2626 = vmatpush3.bf16.msra.mxu0 %v2873_v42  ;;  %v1174_v5 = vsel %vm552_vm4, %v1146_v57, %v1173_v13  ;;  %v1535_v42 = vld [vmem:[#allocation2 + $0x10] sm:$0xf0]  ;;  %v1618_v49 = vrot.slane %v1616_v35, 4  ;;  %v1599_v57 = vshrl.u32 %v1533_v36, 16  ;;  %v1155_v20 = vor.u32 %v1154_v33, %v1151_v9  ;;  %v566_v33 = vld [vmem:[%s3775_s5 + $0x18] sm:$0xff] }
  0xc8   : > { %2627 = vmatprep.subr.bf16.mxu0 %v2875_v50  ;;  %v1633_v48 = vshrl.u32 %v1535_v42, 16  ;;  %v1621_v50 = vrot.slane %v1619_v19, 5  ;;  %v1636_v52 = vshll.u32 %v1535_v42, 16  ;;  %v1612_v13 = vrot.slane %v1055_v3, 5  ;;  %v571_v3 = vld [vmem:[%s3776_s6] sm:$0xff] }
  0xc9   : > { %2726 = vmatpush3.bf16.msra.mxu1 %v2874_v46  ;;  %v1626_v46 = vrot.slane %v1069_v32, 4  ;;  %v563_v32 = vld [vmem:[%s3775_s5] sm:$0xff]  ;;  %v1601_v16 = vrot.slane %v1599_v57, 4  ;;  %v1700_v35 = vrot.slane %v1143_v38, 5  ;;  %v1688_v38 = vrot.slane %v1131_v10, 4 }
  0xca   : > { %1372 = vmatmul.mubr.bf16.gmra.mrb[20].mxu0 %v1102_v0  ;;  %2727 = vmatprep.subr.bf16.mxu1 %v2877_v59  ;;  %v1638_v61 = vrot.slane %v1636_v52, 5  ;;  %v2887_v0 = vld [vmem:[#allocation9 + $0x1f0] sm:$0xff]  }
  0xcb   : > { %2628 = vmatpush3.bf16.msra.mxu0 %v2876_v54  ;;  %1379 = vmatprep.mubr.bf16.mxu0 %v1138_v4  ;;  %v1643_v54 = vrot.slane %v1086_v7, 4  ;;  %v1646_v7 = vrot.slane %v1089_v23, 5  ;;  %v3549_v1 = vor.u32 %v1629_v47, %v1626_v46  ;;  %v1156_v4 = vsel %vm552_vm4, %v3505_v17, %v1155_v20 }
  0xcc   : > { %2629 = vmatprep.subr.bf16.mxu0 %v2878_v60  ;;  %2720 = vmatmul.mubr.bf16.gmra.mrb[12].mxu1 %v1174_v5  ;;  %v1622_v60 = vor.u32 %v1621_v50, %v1618_v49  ;;  %v557_v5 = vld [vmem:[#allocation2 + $0x68] sm:$0x10]  ;;  %v1670_v17 = vrot.slane %v1113_v29, 4 }
  0xcd   : > { %2728 = vmatpush3.bf16.msra.mxu1 %v2877_v59  ;;  %v1635_v59 = vrot.slane %v1633_v48, 4  ;;  %v3555_v23 = vor.u32 %v1646_v7, %v1643_v54  ;;  %1471 = vperm.xlu0 %2819, %v563_v32   ;;  %v558_v25 = vsel %vm3559_vm7, 0, %v557_v5  ;;  %v572_v29 = vld [vmem:[%s3776_s6 + $0x8] sm:$0xff] }
  0xce   : > { %2729 = vmatprep.subr.bf16.mxu1 %v2880_v22  ;;  %v1631_v28 = vsel %vm1597_vm6, %v1622_v60, %v3549_v1  ;;  %559 = vst [vmem:[#allocation2 + $0x68] sm:$0x10] %v558_v25  ;;  %v3603_v42 = vor.u32 %v1673_v12, %v1670_v17  ;;  %v568_v54 = vld [vmem:[%s3775_s5 + $0x28] sm:$0xff] }
  0xcf   : > { %2630 = vmatpush3.bf16.msra.mxu0 %v2879_v18  ;;  %v1639_v6 = vor.u32 %v1638_v61, %v1635_v59  ;;  %v1604_v18 = vrot.slane %v1602_v58, 5  ;;  %v569_v61 = vld [vmem:[%s3775_s5 + $0x30] sm:$0xff] }
  0xd0   : > { %2631 = vmatprep.subr.bf16.mxu0 %v2881_v27  ;;  %v1664_v27 = vrot.slane %v1107_v44, 5  ;;  %v555_v44 = vsel %vm3559_vm7, 0, %v554_v24  ;;  %v1675_v48 = vsel %vm1597_vm6, %v3555_v23, %v3603_v42 }
  0xd1   : > { %2730 = vmatpush3.bf16.msra.mxu1 %v2880_v22  ;;  %v1648_v22 = vsel %vm1597_vm6, %v1639_v6, %v3555_v23  ;;  %1476 = vperm.xlu0 %2819, %v564_v56   ;;  %v1605_v9 = vor.u32 %v1604_v18, %v1601_v16  ;;  %556 = vst [vmem:[#allocation2 + $0x60] sm:$0x10] %v555_v44  ;;  %v570_v6 = vld [vmem:[%s3775_s5 + $0x38] sm:$0xff] }
  0xd2   : > { %1380 = vmatmul.mubr.bf16.gmra.mrb[24].mxu0 %v3519_v39  ;;  %2731 = vmatprep.subr.bf16.mxu1 %v2883_v31  ;;  %v565_v39 = vld [vmem:[%s3775_s5 + $0x10] sm:$0xff]  ;;  %v1665_v19 = vor.u32 %v1664_v27, %v1661_v26 }
  0xd3   : > { %2632 = vmatpush3.bf16.msra.mxu0 %v2882_v30  ;;  %1387 = vmatprep.mubr.bf16.mxu0 %v1165_v45  ;;  %v3579_v30 = vor.u32 %v1612_v13, %v1609_v2  ;;  %v1701_v45 = vor.u32 %v1700_v35, %v1697_v40 }
  0xd4   : > { %2633 = vmatprep.subr.bf16.mxu0 %v2884_v43  ;;  %1481 = vperm.xlu1 %2820, %v565_v39   ;;  %v1691_v43 = vrot.slane %v1134_v51, 5  ;;  %v1666_v46 = vsel %vm1597_vm6, %v3549_v1, %v1665_v19 }
  0xd5   : > { %2732 = vmatpush3.bf16.msra.mxu1 %v2883_v31  ;;  %2739 = vmatprep.mubr.bf16.mxu1 %v1648_v22  ;;  %v561_v31 = vsel %vm3559_vm7, 0, %v560_v62  ;;  %v1614_v36 = vsel %vm1597_vm6, %v1605_v9, %v3579_v30  ;;  %v1546_v52 = vld [vmem:[#allocation2 + $0x68] sm:$0x1f]  ;;  %v1702_v51 = vsel %vm1597_vm6, %v3603_v42, %v1701_v45  ;;  %v1657_v20 = vsel %vm1597_vm6, %v3579_v30, %v3555_v23  ;;  %v578_v62 = vld [vmem:[%s3776_s6 + $0x38] sm:$0xff] }
  0xd6   : > { %2733 = vmatprep.subr.bf16.mxu1 %v2886_v41  ;;  %562 = vst [vmem:[#allocation2 + $0x70] sm:$0x10] %v561_v31  ;;  %2031 = vperm.xlu0 %2819, %v572_v29   ;;  %v1692_v10 = vor.u32 %v1691_v43, %v1688_v38  ;;  %v1713_v59 = vshrl.u32 %v1546_v52, 16  ;;  %v1716_v32 = vshll.u32 %v1546_v52, 16 }
  0xd7   : > { %2634 = vmatpush3.bf16.msra.mxu0 %v2885_v55 }
  0xd8   : > { %2635 = vmatprep.subr.bf16.mxu0 %v2887_v0  ;;  %2026 = vperm.xlu1 %2820, %v571_v3   ;;  %v1693_v7 = vsel %vm1597_vm6, %v1665_v19, %v1692_v10  ;;  %v1715_v39 = vrot.slane %v1713_v59, 4  ;;  %v1718_v0 = vrot.slane %v1716_v32, 5  ;;  %v1545_v1 = vld [vmem:[#allocation2 + $0x60] sm:$0x1f] }
  0xd9   : > { %2734 = vmatpush3.bf16.msra.mxu1 %v2886_v41  ;;  %v575_v41 = vld [vmem:[%s3776_s6 + $0x20] sm:$0xff]  ;;  %v1704_v60 = vshrl.u32 %v1545_v1, 16  ;;  %v1707_v13 = vshll.u32 %v1545_v1, 16 }
  0xda   : > { %1388 = vmatmul.mubr.bf16.gmra.mrb[28].mxu0 %v1156_v4  ;;  %2735 = vmatprep.subr.bf16.mxu1 %v2889_v21  ;;  %v1719_v23 = vor.u32 %v1718_v0, %v1715_v39 }
  0xdb   : > { %2636 = vmatpush3.bf16.msra.mxu0 %v2888_v8  ;;  %1918 = vmatprep.mubr.bf16.mxu0 %v1631_v28  ;;  %v576_v8 = vld [vmem:[%s3776_s6 + $0x28] sm:$0xff]  ;;  %v1706_v16 = vrot.slane %v1704_v60, 4  ;;  %v1709_v18 = vrot.slane %v1707_v13, 5 }
  0xdc   : > { %2637 = vmatprep.subr.bf16.mxu0 %v2890_v11  ;;  %1486 = vperm.xlu1 %2820, %v566_v33   ;;  %v1720_v56 = vsel %vm1597_vm6, %v1692_v10, %v1719_v23 }
  0xdd   : > { %2736 = vmatpush3.bf16.msra.mxu1 %v2889_v21  ;;  %v1547_v47 = vld [vmem:[#allocation2 + $0x70] sm:$0x1f]  ;;  %2036 = vperm.xlu0 %2819, %v573_v37   ;;  %v1710_v3 = vor.u32 %v1709_v18, %v1706_v16 }
  0xde   : > { %2737 = vmatprep.subr.bf16.mxu1 %v2892_v15  ;;  %v1722_v49 = vshrl.u32 %v1547_v47, 16  ;;  %v1725_v50 = vshll.u32 %v1547_v47, 16 }
  0xdf   : > { %2638 = vmatpush3.bf16.msra.mxu0 %v2891_v34  ;;  %v1711_v4 = vsel %vm1597_vm6, %v3603_v42, %v1710_v3 }
  0xe0   : > { %1491 = vperm.xlu1 %2820, %v567_v63   ;;  %v1724_v57 = vrot.slane %v1722_v49, 4  ;;  %v1727_v58 = vrot.slane %v1725_v50, 5 }
  0xe1   : > { %2738 = vmatpush3.bf16.msra.mxu1 %v2892_v15  ;;  %2041 = vperm.xlu0 %2819, %v574_v53  }
  0xe2   : > { %1919 = vmatmul.mubr.bf16.vlgmr.msra.gmra.mrb[32].mxu0 %v1614_v36  ;;  %v1728_v55 = vor.u32 %v1727_v58, %v1724_v57 }
  0xe3   : > { %1926 = vmatprep.mubr.bf16.mxu0 %v1666_v46 }
  0xe4   : > { %2740 = vmatmul.mubr.bf16.vlgmr.msra.gmra.mrb[16].mxu1 %v1675_v48  ;;  %1496 = vperm.xlu1 %2820, %v568_v54   ;;  %v1729_v2 = vsel %vm1597_vm6, %v1701_v45, %v1728_v55 }
  0xe5   : > { %2743 = vmatprep.mubr.bf16.mxu1 %v1702_v51  ;;  %2046 = vperm.xlu0 %2819, %v575_v41  }
  0xe8   : > { %1501 = vperm.xlu1 %2820, %v569_v61  }
  0xe9   : > { %2051 = vperm.xlu0 %2819, %v576_v8  }
  0xea   : > { %1927 = vmatmul.mubr.bf16.gmra.mrb[36].mxu0 %v1657_v20 }
  0xeb   : > { %1934 = vmatprep.mubr.bf16.mxu0 %v1693_v7 }
  0xec   : > { %2744 = vmatmul.mubr.bf16.gmra.mrb[20].mxu1 %v1729_v2  ;;  %1506 = vperm.xlu1 %2820, %v570_v6  }
  0xed   : > { %2056 = vperm.xlu0 %2819, %v577_v14  }
  0xf0   : > { %2061 = vperm.xlu1 %2820, %v578_v62  }
  0xf2   : > { %1935 = vmatmul.mubr.bf16.gmra.mrb[40].mxu0 %v1675_v48 }
  0xf3   : > { %1942 = vmatprep.mubr.bf16.mxu0 %v1720_v56 }
  0xfa   : > { %1943 = vmatmul.mubr.bf16.gmra.mrb[44].mxu0 %v1711_v4 }
 0x14c   : > { %v1472_v55 = vpop.permute.xlu0 %1471 }
 0x150   : > { %v1477_v6 = vpop.permute.xlu0 %1476 }
 0x153   : > { %v1482_v52 = vpop.permute.xlu1 %1481 }
 0x157   : > { %v3658_v59 = vpop.permute.xlu1 %2026 }
 0x15b   : > { %v1487_v2 = vpop.permute.xlu1 %1486 }
 0x175   : > { %v2535_v21 = vpop.f32.mrb[0].mxu0 }
 0x176   : > { %v2536_v5 = vpop.f32.mrb[1].mxu0 }
 0x177   : > { %v2693_v22 = vpop.f32.mrb[0].mxu1  ;;  %v2537_v11 = vadd.f32 %v2536_v5, %v2535_v21  ;;  %v2538_v26 = vpop.f32.mrb[2].mxu0 }
 0x178   : > { %v941_v24 = vpop.f32.mrb[1].mxu1  ;;  %v2539_v28 = vpop.f32.mrb[3].mxu0 }
 0x179   : > { %v2694_v27 = vpop.f32.mrb[2].mxu1  ;;  %v2540_v17 = vadd.f32 %v2539_v28, %v2538_v26  ;;  %v942_v31 = vadd.f32 %v2537_v11, %v941_v24  ;;  %v1492_v21 = vpop.permute.xlu1 %1491 }
 0x17a   : > { %v944_v30 = vpop.f32.mrb[3].mxu1 }
 0x17b   : > { %v945_v9 = vadd.f32 %v2540_v17, %v944_v30 }
 0x17d   : > { %v2541_v12 = vpop.f32.mrb[4].mxu0 }
 0x17e   : > { %v2542_v25 = vpop.f32.mrb[5].mxu0 }
 0x17f   : > { %v2543_v44 = vadd.f32 %v2542_v25, %v2541_v12  ;;  %v2544_v29 = vpop.f32.mrb[6].mxu0 }
 0x180   : > { %v2545_v33 = vpop.f32.mrb[7].mxu0 }
 0x181   : > { %v950_v34 = vadd.f32 %v2693_v22, %v2543_v44  ;;  %v2546_v15 = vadd.f32 %v2545_v33, %v2544_v29  ;;  %v2697_v35 = vpop.f32.mrb[4].mxu1  ;;  %v1497_v33 = vpop.permute.xlu1 %1496 }
 0x182   : > { %v957_v36 = vpop.f32.mrb[5].mxu1 }
 0x183   : > { %v953_v40 = vadd.f32 %v2694_v27, %v2546_v15  ;;  %v2698_v37 = vpop.f32.mrb[6].mxu1 }
 0x184   : > { %v960_v43 = vpop.f32.mrb[7].mxu1 }
 0x185   : > { %v2547_v19 = vpop.f32.mrb[8].mxu0 }
 0x186   : > { %v2548_v42 = vpop.f32.mrb[9].mxu0 }
 0x187   : > { %v2549_v63 = vadd.f32 %v2548_v42, %v2547_v19  ;;  %v2550_v38 = vpop.f32.mrb[10].mxu0 }
 0x188   : > { %v2551_v45 = vpop.f32.mrb[11].mxu0 }
 0x189   : > { %v2552_v46 = vadd.f32 %v2551_v45, %v2550_v38  ;;  %v958_v47 = vadd.f32 %v2549_v63, %v957_v36  ;;  %v1502_v38 = vpop.permute.xlu1 %1501 }
 0x18b   : > { %v961_v48 = vadd.f32 %v2552_v46, %v960_v43 }
 0x18d   : > { %v2553_v49 = vpop.f32.mrb[12].mxu0 }
 0x18e   : > { %v2554_v50 = vpop.f32.mrb[13].mxu0 }
 0x18f   : > { %v2555_v53 = vadd.f32 %v2554_v50, %v2553_v49  ;;  %v2556_v10 = vpop.f32.mrb[14].mxu0 }
 0x190   : > { %v2557_v51 = vpop.f32.mrb[15].mxu0 }
 0x191   : > { %v3654_v54 = vadd.f32 %v2697_v35, %v2555_v53  ;;  %v2558_v57 = vadd.f32 %v2557_v51, %v2556_v10  ;;  %v1507_v51 = vpop.permute.xlu1 %1506 }
 0x193   : > { %v3656_v58 = vadd.f32 %v2698_v37, %v2558_v57  ;;  %v2032_v57 = vpop.permute.xlu0 %2031 }
 0x195   : > { %v2587_v32 = vpop.f32.mrb[16].mxu0 }
 0x196   : > { %v2588_v41 = vpop.f32.mrb[17].mxu0 }
 0x197   : > { %v2589_v20 = vadd.f32 %v2588_v41, %v2587_v32  ;;  %v2590_v61 = vpop.f32.mrb[18].mxu0  ;;  %v2717_v7 = vpop.f32.mrb[8].mxu1 }
 0x198   : > { %v2591_v39 = vpop.f32.mrb[19].mxu0  ;;  %v1430_v1 = vpop.f32.mrb[9].mxu1 }
 0x199   : > { %v2592_v0 = vadd.f32 %v2591_v39, %v2590_v61  ;;  %v1431_v8 = vadd.f32 %v2589_v20, %v1430_v1  ;;  %v2718_v60 = vpop.f32.mrb[10].mxu1 }
 0x19a   : > { %v1433_v13 = vpop.f32.mrb[11].mxu1 }
 0x19b   : > { %v1509_v23 = vmul.f32 %v1472_v55, %v1431_v8  ;;  %v1434_v14 = vadd.f32 %v2592_v0, %v1433_v13 }
 0x19d   : > { %v2593_v16 = vpop.f32.mrb[20].mxu0  ;;  %v1517_v18 = vadd.f32 %v1509_v23, %v942_v31  ;;  %v1510_v62 = vmul.f32 %v1477_v6, %v1434_v14 }
 0x19e   : > { %v2594_v56 = vpop.f32.mrb[21].mxu0 }
 0x19f   : > { %v2595_v3 = vadd.f32 %v2594_v56, %v2593_v16  ;;  %v2596_v4 = vpop.f32.mrb[22].mxu0  ;;  %v1518_v22 = vadd.f32 %v1510_v62, %v945_v9  ;;  %v2721_v24 = vpop.f32.mrb[12].mxu1 }
 0x1a0   : > { %v2597_v5 = vpop.f32.mrb[23].mxu0  ;;  %v1446_v27 = vpop.f32.mrb[13].mxu1 }
 0x1a1   : > { %v1439_v11 = vadd.f32 %v2717_v7, %v2595_v3  ;;  %v2598_v26 = vadd.f32 %v2597_v5, %v2596_v4  ;;  %v2722_v28 = vpop.f32.mrb[14].mxu1 }
 0x1a2   : > { %v1449_v12 = vpop.f32.mrb[15].mxu1 }
 0x1a3   : > { %v1511_v30 = vmul.f32 %v1482_v52, %v1439_v11  ;;  %v1442_v17 = vadd.f32 %v2718_v60, %v2598_v26 }
 0x1a5   : > { %v3660_v25 = vadd.f32 %v1511_v30, %v950_v34  ;;  %v1512_v44 = vmul.f32 %v1487_v2, %v1442_v17  ;;  %v2599_v29 = vpop.f32.mrb[24].mxu0  ;;  %v2037_v2 = vpop.permute.xlu0 %2036 }
 0x1a6   : > { %v2600_v31 = vpop.f32.mrb[25].mxu0 }
 0x1a7   : > { %v3662_v15 = vadd.f32 %v1512_v44, %v953_v40  ;;  %v2601_v35 = vadd.f32 %v2600_v31, %v2599_v29  ;;  %v2602_v19 = vpop.f32.mrb[26].mxu0 }
 0x1a8   : > { %v2603_v9 = vpop.f32.mrb[27].mxu0 }
 0x1a9   : > { %v2604_v36 = vadd.f32 %v2603_v9, %v2602_v19  ;;  %v1447_v42 = vadd.f32 %v2601_v35, %v1446_v27  ;;  %v2042_v4 = vpop.permute.xlu0 %2041 }
 0x1ab   : > { %v1513_v37 = vmul.f32 %v1492_v21, %v1447_v42  ;;  %v1450_v63 = vadd.f32 %v2604_v36, %v1449_v12 }
 0x1ad   : > { %v3664_v43 = vadd.f32 %v1513_v37, %v958_v47  ;;  %v1514_v45 = vmul.f32 %v1497_v33, %v1450_v63  ;;  %v2605_v46 = vpop.f32.mrb[28].mxu0  ;;  %v2047_v9 = vpop.permute.xlu0 %2046 }
 0x1ae   : > { %v2606_v34 = vpop.f32.mrb[29].mxu0 }
 0x1af   : > { %v3666_v49 = vadd.f32 %v1514_v45, %v961_v48  ;;  %v2607_v50 = vadd.f32 %v2606_v34, %v2605_v46  ;;  %v2608_v52 = vpop.f32.mrb[30].mxu0 }
 0x1b0   : > { %v2609_v53 = vpop.f32.mrb[31].mxu0 }
 0x1b1   : > { %v1455_v40 = vadd.f32 %v2721_v24, %v2607_v50  ;;  %v2610_v10 = vadd.f32 %v2609_v53, %v2608_v52 }
 0x1b3   : > { %v1515_v32 = vmul.f32 %v1502_v38, %v1455_v40  ;;  %v1458_v55 = vadd.f32 %v2722_v28, %v2610_v10 }
 0x1b5   : > { %v3669_v41 = vadd.f32 %v1515_v32, %v3654_v54  ;;  %v1516_v20 = vmul.f32 %v1507_v51, %v1458_v55  ;;  %v2639_v47 = vpop.f32.mrb[32].mxu0 }
 0x1b6   : > { %v2640_v61 = vpop.f32.mrb[33].mxu0 }
 0x1b7   : > { %v3672_v7 = vadd.f32 %v1516_v20, %v3656_v58  ;;  %v2641_v48 = vadd.f32 %v2640_v61, %v2639_v47  ;;  %v2642_v39 = vpop.f32.mrb[34].mxu0  ;;  %v2741_v0 = vpop.f32.mrb[16].mxu1 }
 0x1b8   : > { %v2643_v1 = vpop.f32.mrb[35].mxu0  ;;  %v1985_v60 = vpop.f32.mrb[17].mxu1 }
 0x1b9   : > { %v2644_v8 = vadd.f32 %v2643_v1, %v2642_v39  ;;  %v1986_v13 = vadd.f32 %v2641_v48, %v1985_v60  ;;  %v2742_v6 = vpop.f32.mrb[18].mxu1 }
 0x1ba   : > { %v1988_v23 = vpop.f32.mrb[19].mxu1 }
 0x1bb   : > { %v2064_v14 = vmul.f32 %v3658_v59, %v1986_v13  ;;  %v1989_v54 = vadd.f32 %v2644_v8, %v1988_v23 }
 0x1bd   : > { %v2645_v16 = vpop.f32.mrb[36].mxu0  ;;  %v2072_v62 = vadd.f32 %v2064_v14, %v1517_v18  ;;  %v2065_v56 = vmul.f32 %v2032_v57, %v1989_v54  ;;  %v2052_v57 = vpop.permute.xlu0 %2051 }
 0x1be   : > { %v2646_v3 = vpop.f32.mrb[37].mxu0 }
 0x1bf   : > { %v2647_v58 = vadd.f32 %v2646_v3, %v2645_v16  ;;  %v2648_v21 = vpop.f32.mrb[38].mxu0  ;;  %v2073_v5 = vadd.f32 %v2065_v56, %v1518_v22  ;;  %v2745_v11 = vpop.f32.mrb[20].mxu1  ;;  %v2150_v30 = vmul.f32 %v2072_v62, %v2072_v62 }
 0x1c0   : > { %v2649_v24 = vpop.f32.mrb[39].mxu0  ;;  %v2001_v28 = vpop.f32.mrb[21].mxu1 }
 0x1c1   : > { %v1994_v26 = vadd.f32 %v2741_v0, %v2647_v58  ;;  %v2650_v27 = vadd.f32 %v2649_v24, %v2648_v21  ;;  %v2499_v17 = vpack.c.bf16 %v2073_v5, %v2072_v62  ;;  %v2136_v12 = vadd.f32 %v2073_v5, %v2072_v62  ;;  %v2746_v59 = vpop.f32.mrb[22].mxu1  ;;  %v2057_v23 = vpop.permute.xlu0 %2056 }
 0x1c2   : > { %v2151_v44 = vmul.f32 %v2073_v5, %v2073_v5  ;;  %v2004_v18 = vpop.f32.mrb[23].mxu1  ;;  %v2062_v62 = vpop.permute.xlu1 %2061 }
 0x1c3   : > { %v2066_v29 = vmul.f32 %v2037_v2, %v1994_v26  ;;  %v1997_v31 = vadd.f32 %v2742_v6, %v2650_v27  ;;  %2500 = vst [vmem:[%s3676_s18] sm:$0xff] %v2499_v17  }
 0x1c4   : > { %v2158_v33 = vadd.f32 %v2151_v44, %v2150_v30 }
 0x1c5   : > { %v2074_v22 = vadd.f32 %v2066_v29, %v3660_v25  ;;  %v2067_v35 = vmul.f32 %v2042_v4, %v1997_v31  ;;  %v2651_v19 = vpop.f32.mrb[40].mxu0 }
 0x1c6   : > { %v2652_v36 = vpop.f32.mrb[41].mxu0 }
 0x1c7   : > { %v2137_v42 = vadd.f32 %v2136_v12, %v2074_v22  ;;  %v2152_v37 = vmul.f32 %v2074_v22, %v2074_v22  ;;  %v2075_v63 = vadd.f32 %v2067_v35, %v3662_v15  ;;  %v2653_v38 = vadd.f32 %v2652_v36, %v2651_v19  ;;  %v2654_v45 = vpop.f32.mrb[42].mxu0 }
 0x1c8   : > { %v2655_v46 = vpop.f32.mrb[43].mxu0 }
 0x1c9   : > { %v2159_v34 = vadd.f32 %v2158_v33, %v2152_v37  ;;  %v2504_v50 = vpack.c.bf16 %v2075_v63, %v2074_v22  ;;  %v2153_v52 = vmul.f32 %v2075_v63, %v2075_v63  ;;  %v2656_v53 = vadd.f32 %v2655_v46, %v2654_v45 }
 0x1ca   : > { %v2002_v40 = vadd.f32 %v2653_v38, %v2001_v28  ;;  %v2138_v10 = vadd.f32 %v2137_v42, %v2075_v63 }
 0x1cb   : > { %2516 = vst [vmem:[%s3676_s18 + $0x8] sm:$0xff] %v2504_v50   ;;  %v2160_v25 = vadd.f32 %v2159_v34, %v2153_v52  ;;  %v2005_v51 = vadd.f32 %v2656_v53, %v2004_v18 }
 0x1cc   : > { %v2068_v32 = vmul.f32 %v2047_v9, %v2002_v40 }
 0x1cd   : > { %v2069_v55 = vmul.f32 %v2052_v57, %v2005_v51  ;;  %v2657_v20 = vpop.f32.mrb[44].mxu0 }
 0x1ce   : > { %v2076_v47 = vadd.f32 %v2068_v32, %v3664_v43  ;;  %v2658_v15 = vpop.f32.mrb[45].mxu0 }
 0x1cf   : > { %v2077_v61 = vadd.f32 %v2069_v55, %v3666_v49  ;;  %v2659_v48 = vadd.f32 %v2658_v15, %v2657_v20  ;;  %v2660_v39 = vpop.f32.mrb[46].mxu0 }
 0x1d0   : > { %v2139_v0 = vadd.f32 %v2138_v10, %v2076_v47  ;;  %v2154_v1 = vmul.f32 %v2076_v47, %v2076_v47  ;;  %v2661_v2 = vpop.f32.mrb[47].mxu0 }
 0x1d1   : > { %v2509_v8 = vpack.c.bf16 %v2077_v61, %v2076_v47  ;;  %v2155_v60 = vmul.f32 %v2077_v61, %v2077_v61  ;;  %v2010_v13 = vadd.f32 %v2745_v11, %v2659_v48  ;;  %v2662_v6 = vadd.f32 %v2661_v2, %v2660_v39 }
 0x1d2   : > { %v2161_v14 = vadd.f32 %v2160_v25, %v2154_v1  ;;  %v2140_v54 = vadd.f32 %v2139_v0, %v2077_v61 }
 0x1d3   : > { %2517 = vst [vmem:[%s3676_s18 + $0x10] sm:$0xff] %v2509_v8   ;;  %v2070_v16 = vmul.f32 %v2057_v23, %v2010_v13  ;;  %v2013_v43 = vadd.f32 %v2746_v59, %v2662_v6 }
 0x1d4   : > { %v2162_v49 = vadd.f32 %v2161_v14, %v2155_v60 }
 0x1d5   : > { %v2078_v56 = vadd.f32 %v2070_v16, %v3669_v41  ;;  %v2071_v3 = vmul.f32 %v2062_v62, %v2013_v43 }
 0x1d7   : > { %v2141_v4 = vadd.f32 %v2140_v54, %v2078_v56  ;;  %v2156_v58 = vmul.f32 %v2078_v56, %v2078_v56  ;;  %v2079_v21 = vadd.f32 %v2071_v3, %v3672_v7 }
 0x1d9   : > { %v2163_v5 = vadd.f32 %v2162_v49, %v2156_v58  ;;  %v2514_v41 = vpack.c.bf16 %v2079_v21, %v2078_v56  ;;  %v2142_v24 = vadd.f32 %v2141_v4, %v2079_v21  ;;  %v2157_v11 = vmul.f32 %v2079_v21, %v2079_v21 }
 0x1db   : > { %2518 = vst [vmem:[%s3676_s18 + $0x18] sm:$0xff] %v2514_v41   ;;  %v2143_v26 = vrot.slane %v2142_v24, 4  ;;  %v2164_v27 = vadd.f32 %v2163_v5, %v2157_v11 }
 0x1dc   : > { %2994 = shalt.err (!%p2991_p8)
}
 0x1dd   : > { %s2995_s23 = scalar_lea.hbm %s3692_s29, 512  ;;  %s2999_s12 = scalar_lea.hbm %s3777_s7, 1024 }
 0x1de   : > { %p2996_p10 = scmp.ne.s32.totalorder %s3692_s29, %s2995_s23  ;;  %p3000_p11 = scmp.lt.u32.totalorder %s3692_s29, %s3777_s7 }
 0x1df   : > { %p3001_p13 = scmp.lt.u32.totalorder %s2999_s12, %s2995_s23  ;;  %p3003_p7 = scmp.lt.u32.totalorder %s2995_s23, %s3692_s29 }
 0x1e0   : > { %p2997_p0 = pnand %p2996_p10, %p3238_p12 }
 0x1e1   : > { %p3002_p3 = por %p3001_p13, %p3000_p11 }
 0x1e2   : > { %p2998_p4 = pneg %p2997_p0 }
 0x1e3   : > { %p3004_p9 = por %p3003_p7, %p3002_p3 }
 0x1e5   : > { %p3005_p1 = pnand %p3004_p9, %p2998_p4 }
 0x1e7   : > { %3008 = shalt.err (!%p3005_p1)
}
 0x1e8   : > { %s3096_s25 = smov 64   ;;  %s3097_s22 = smov 4   ;;  %v2144_v7 = vadd.f32 %v2143_v26, %v2142_v24  ;;  %v2165_v28 = vrot.slane %v2164_v27, 4 }
 0x1e9   : > { %2755 = dma.vmem_to_hbm [thread:$0]  (%p3238_p12), %s3694_s14, 512, %s3692_s29, %s2173_s26, %s3096_s25, %s3096_s25, %s3097_s22  }
 0x1ea   : > { %s2380_s18 = sshll.u32 %s3330_s27, 1  ;;  %v2145_v30 = vrot.slane %v2144_v7, 2  ;;  %v2166_v17 = vadd.f32 %v2165_v28, %v2164_v27  ;;  %s2480_s10 = sshll.u32 %s3165_s9, 5 }
 0x1eb   : > { %s418_s4 = scalar_lea.vmem [#allocation11], %s2380_s18  ;;  %s3726_s29 = scalar_lea.hbm %s3778_s8, %s2480_s10 }
 0x1ec   : > { %v2146_v12 = vadd.f32 %v2145_v30, %v2144_v7  ;;  %v2167_v44 = vrot.slane %v2166_v17, 2  ;;  %s2207_s16 = sshll.u32 %s418_s4, 4  ;;  %s2178_s26 = scalar_lea.sflag [#allocation12], %s3330_s27  ;;  %s3728_s16 = int_to_ptr.vmem [resolvable:$true] %s2207_s16 }
 0x1ed   : > { %s3009_s19 = scalar_lea.vmem %s3728_s16, 32  ;;  %s3098_s9 = smov [#allocation11]  }
 0x1ee   : > { %v2147_v59 = vrot.slane %v2146_v12, 1  ;;  %v2168_v29 = vadd.f32 %v2167_v44, %v2166_v17  ;;  %p3010_p5 = scmp.ne.s32.totalorder %s3728_s16, %s3009_s19  ;;  %s3013_s2 = sshll.u32 %s3098_s9, 4  ;;  %s3014_s2 = int_to_ptr.vmem [resolvable:$false] %s3013_s2 }
 0x1ef   : > { %s3015_s21 = scalar_lea.vmem %s3014_s2, 64  ;;  %p3016_p8 = scmp.lt.s32.totalorder %s3728_s16, %s3014_s2 }
 0x1f0   : > { %v2148_v31 = vadd.f32 %v2147_v59, %v2146_v12  ;;  %v2169_v18 = vrot.slane %v2168_v29, 1  ;;  %p3011_p2 = pnand %p3010_p5, %p3238_p12  ;;  %p3017_p10 = scmp.lt.s32.totalorder %s3015_s21, %s3009_s19 }
 0x1f2   : > { %2149 = vst [vmem:[%s418_s4] sm:$0x1] %v2148_v31  ;;  %v2170_v33 = vadd.f32 %v2169_v18, %v2168_v29  ;;  %p3012_p6 = pneg %p3011_p2  ;;  %p3018_p0 = por %p3017_p10, %p3016_p8 }
 0x1f4   : > { %2171 = vst [vmem:[%s418_s4 + $0x1] sm:$0x1] %v2170_v33  ;;  %p3019_p4 = pnand %p3018_p0, %p3012_p6 }
 0x1f6   : > { %3022 = shalt.err (!%p3019_p4)
}
 0x1f7   : > { %s3023_s27 = scalar_lea.hbm %s3726_s29, 32  ;;  %s3027_s17 = scalar_lea.hbm %s3778_s8, 64 }
 0x1f8   : > { %p3024_p11 = scmp.ne.s32.totalorder %s3726_s29, %s3023_s27  ;;  %p3028_p7 = scmp.lt.u32.totalorder %s3726_s29, %s3778_s8 }
 0x1f9   : > { %p3029_p9 = scmp.lt.u32.totalorder %s3027_s17, %s3023_s27  ;;  %p3031_p5 = scmp.lt.u32.totalorder %s3023_s27, %s3726_s29 }
 0x1fa   : > { %p3025_p13 = pnand %p3024_p11, %p3238_p12 }
 0x1fb   : > { %p3030_p1 = por %p3029_p9, %p3028_p7 }
 0x1fc   : > { %p3026_p3 = pneg %p3025_p13 }
 0x1fd   : > { %p3032_p2 = por %p3031_p5, %p3030_p1 }
 0x1ff   : > { %p3033_p6 = pnand %p3032_p2, %p3026_p3 }
 0x201   : > { %3036 = shalt.err (!%p3033_p6)
}
 0x202   : > { %2756 = dma.vmem_to_hbm [thread:$0]  (%p3238_p12), %s3728_s16, 32, %s3726_s29, %s2178_s26  }
 0x203 PF: > { %s3817_s20 = sld [smem:[#allocation18_spill]]  ;;  %s3818_s25 = sld [smem:[#allocation20_spill]] }
 0x204   : > { %p3820_p10 = scmp.ge.s32.totalorder %s3087_s30, 2 }
 0x209   : > { %s2219_s22 = sand.u32 1, %s3817_s20   ;;  %p3819_p8 = scmp.ne.s32.totalorder %s3818_s25, 0 }
 0x20a   : > { %s2220_s18 = scalar_lea.sflag [#allocation6], %s2219_s22 }
 0x20b   : > { %p2771_p0 = pnand %p3820_p10, %p3819_p8 }
 0x20d   : > { %3066 = dma.done.wait (!%p2771_p0), %s2220_s18, 512  }
 0x20e   : > { %3068 = vsyncadd (!%p2771_p0), %s2220_s18, 4294966784  ;;  %s2229_s10 = scalar_lea.sflag [#allocation12], %s2219_s22 }
 0x20f   : > { %3070 = dma.done.wait (!%p2771_p0), %s2229_s10, 32  }
 0x210   : > { %3072 = vsyncadd (!%p2771_p0), %s2229_s10, 4294967264  ;;  %s3821_s30 = sld [smem:[#allocation21_spill]]  ;;  %s3822_s24 = sld [smem:[#allocation19_spill]] }
 0x211   : > { %s3823_s29 = sld [smem:[#allocation22_spill]]  ;;  %s3824_s27 = smov %s3079_s28 }
 0x216   : > { %p28_p12 = scmp.ge.s32.totalorder %s3821_s30, 4   ;;  %s3825_s28 = smov %s3822_s24 }
 0x218   :  { %30 = sbr.rel (!%p28_p12) target bundleno = 12 (0xc), region = 135 }
 0x21f   :  { %2234 = vsyncpa [#allocation5], 1 }
 0x220   :  { %2236 = vsyncpa [#allocation5 + $0x1], 1 }
 0x221   :  { %2237 = vsyncpa [#allocation8], 1 }
 0x222   :  { %2239 = vsyncpa [#allocation8 + $0x1], 1 }
 0x223   :  { %2240 = vsyncpa [#allocation6], 1 }
 0x224   :  { %2242 = vsyncpa [#allocation6 + $0x1], 1 }
 0x225   :  { %2243 = vsyncpa [#allocation12], 1 }
 0x226   :  { %2245 = vsyncpa [#allocation12 + $0x1], 1 }

</bundles_post_ra>
